<compile_context>
chip_gen: v6e
topology: v6e:2x2x1
jax: 0.10.0
libtpu: 0.0.40
codegen_flags: <defaults>
</compile_context>

<pallas_src>
import functools
import math

import jax
import jax.numpy as jnp
from jax.experimental import pallas as pl
from jax.experimental.pallas import tpu as pltpu


# ---------------------------------------------------------------------------
# Pallas kernel: neox-style RoPE on one (t_tile, H*D) token tile of q and k.
# ---------------------------------------------------------------------------
def _rope_kernel(cos_ref, sin_ref, q_ref, k_ref, q_out_ref, k_out_ref, *,
                 head_size: int, rotary_dim: int, rep_width: int):
    D = head_size
    half = rotary_dim // 2
    t = q_ref.shape[0]
    dt = q_ref.dtype

    # Per-tile cos/sin expansion, done once and shared by q and k.  Only
    # replicated to rep_width lanes (a small multiple of 128), NOT full width.
    # Per-head lane pattern:
    #   cos_head = [ cos | cos | 1 ... 1 ]   (rotary halves + pass-through)
    #   sin_head = [-sin | sin | 0 ... 0 ]
    cos = cos_ref[...].astype(dt)                       # (t, half)
    sin = sin_ref[...].astype(dt)                       # (t, half)
    neg_sin = -sin
    cos_pieces = [cos, cos]
    sin_pieces = [neg_sin, sin]
    if rotary_dim < D:
        cos_pieces.append(jnp.ones((t, D - rotary_dim), dt))
        sin_pieces.append(jnp.zeros((t, D - rotary_dim), dt))
    n_rep = rep_width // D
    cos_rep = jnp.concatenate(cos_pieces * n_rep, axis=-1)   # (t, rep_width)
    sin_rep = jnp.concatenate(sin_pieces * n_rep, axis=-1)   # (t, rep_width)

    def second_half_mask(width):
        lane = jax.lax.broadcasted_iota(jnp.int32, (1, width), 1)
        return (lane % D) >= half                            # (1, width)

    def rope_chunk(x, width, cos_c, sin_c, second):
        # rotate-half partner: x[lane+half] on first-half lanes,
        # x[lane-half] on second-half lanes.  Two XLU rolls + select; the
        # roll wrap-around only lands on lanes where the other roll (or a
        # zero sin lane) is selected, so it never leaks into the result.
        partner = jnp.where(second,
                            pltpu.roll(x, shift=half, axis=1),
                            pltpu.roll(x, shift=width - half, axis=1))
        return x * cos_c + partner * sin_c

    sec_rep = second_half_mask(rep_width)

    def apply(x_ref, o_ref):
        w = x_ref.shape[1]
        n_full = w // rep_width
        for c in range(n_full):                              # 128-aligned chunks
            off = c * rep_width
            o_ref[:, off:off + rep_width] = rope_chunk(
                x_ref[:, off:off + rep_width], rep_width,
                cos_rep, sin_rep, sec_rep).astype(o_ref.dtype)
        rem = w - n_full * rep_width
        if rem:
            # Narrow remainder (e.g. num_kv_heads*head_size < 128): inherently
            # a masked narrow store — accepted, traffic is small.
            off = n_full * rep_width
            o_ref[:, off:off + rem] = rope_chunk(
                x_ref[:, off:off + rem], rem,
                cos_rep[:, :rem], sin_rep[:, :rem],
                second_half_mask(rem)).astype(o_ref.dtype)

    apply(q_ref, q_out_ref)
    apply(k_ref, k_out_ref)


# ---------------------------------------------------------------------------
# Wrapper: tile selection + pallas_call (no padding, partial last block OK).
# ---------------------------------------------------------------------------
def _rope_pallas(cos, sin, q, k, *, head_size: int, rotary_dim: int,
                 t_tile=None):
    T, wq = q.shape
    Tk, wk = k.shape
    assert Tk == T
    half = rotary_dim // 2
    D = head_size
    wmax = max(wq, wk)
    rep_width = min(D * 128 // math.gcd(D, 128), wmax)   # multiple of D

    itemsize = jnp.dtype(q.dtype).itemsize
    cs_itemsize = jnp.dtype(cos.dtype).itemsize
    sub = max(8, 32 // max(itemsize, 1))   # sublane packing: 8 f32 / 16 bf16 / 32 i8

    try:
        vmem_cap = int(pltpu.get_tpu_info().vmem_capacity_bytes)
    except Exception:
        vmem_cap = 0
    if vmem_cap <= 0:
        vmem_cap = 64 << 20   # conservative default, safe on v7x

    # Bytes per token through VMEM: double-buffered q/k in+out blocks,
    # cos/sin input blocks, plus rough in-kernel temporaries.
    io_row = 2 * (2 * (wq + wk) * itemsize + 2 * half * cs_itemsize)
    tmp_row = 8 * rep_width * itemsize
    row_bytes = max(io_row + tmp_row, 1)

    auto = t_tile is None
    if auto:
        budget = vmem_cap // 3 if vmem_cap <= (64 << 20) else vmem_cap // 4
        t_tile = min(1024, budget // row_bytes)
    t_tile = int(max(1, min(int(t_tile), T)))
    if t_tile < T:
        t_tile = min(T, max(sub, (t_tile // sub) * sub))
    if auto and t_tile >= T and T > sub:
        # Ensure >= 2 grid steps so the token axis can shard across both
        # TensorCores on v7x megacore (negligible cost on single-core chips).
        t_tile = (-(-((T + 1) // 2) // sub)) * sub

    # Partial final block is handled by Pallas (OOB reads ignored per-row,
    # OOB writes discarded) — no pad / slice-back HBM copies.
    n_blocks = pl.cdiv(T, t_tile)

    block_bytes = t_tile * (2 * (wq + wk) * itemsize + 2 * half * cs_itemsize)
    vmem_need = 2 * block_bytes + t_tile * tmp_row
    vmem_limit = int(min(vmem_cap * 3 // 4,
                         max(32 << 20, vmem_need * 3 // 2 + (2 << 20))))

    kernel = functools.partial(
        _rope_kernel, head_size=head_size, rotary_dim=rotary_dim,
        rep_width=rep_width)

    q_out, k_out = pl.pallas_call(
        kernel,
        out_shape=(jax.ShapeDtypeStruct((T, wq), q.dtype),
                   jax.ShapeDtypeStruct((T, wk), k.dtype)),
        grid=(n_blocks,),
        in_specs=[
            pl.BlockSpec((t_tile, half), lambda i: (i, 0)),   # cos
            pl.BlockSpec((t_tile, half), lambda i: (i, 0)),   # sin
            pl.BlockSpec((t_tile, wq), lambda i: (i, 0)),     # q
            pl.BlockSpec((t_tile, wk), lambda i: (i, 0)),     # k
        ],
        out_specs=(
            pl.BlockSpec((t_tile, wq), lambda i: (i, 0)),
            pl.BlockSpec((t_tile, wk), lambda i: (i, 0)),
        ),
        compiler_params=pltpu.CompilerParams(
            dimension_semantics=("parallel",),
            vmem_limit_bytes=vmem_limit),
    )(cos, sin, q, k)
    return q_out, k_out


# ---------------------------------------------------------------------------
# Module (parameter / cache setup in plain JAX, forward hot path in Pallas)
# ---------------------------------------------------------------------------
class Phi3LongRoPEScaledRotaryEmbedding:

    def __init__(self, head_size, rotary_dim, max_position_embeddings,
                 original_max_position_embeddings, base, is_neox_style, dtype,
                 short_factor, long_factor,
                 short_mscale=None, long_mscale=None):
        if not is_neox_style:
            raise ValueError("only supports neox_style.")
        self.head_size = head_size
        self.rotary_dim = rotary_dim
        self.max_position_embeddings = max_position_embeddings
        self.original_max_position_embeddings = original_max_position_embeddings
        self.base = base
        self.dtype = dtype

        scale = max_position_embeddings / original_max_position_embeddings
        if scale <= 1.0:
            scaling_factor = 1.0
        else:
            scaling_factor = math.sqrt(
                1 + math.log(scale) / math.log(original_max_position_embeddings))
        if short_mscale is None:
            short_mscale = scaling_factor
        if long_mscale is None:
            long_mscale = scaling_factor
        self.short_mscale = short_mscale
        self.long_mscale = long_mscale

        short_cache = self._compute_cos_sin_cache(
            original_max_position_embeddings, short_factor, short_mscale)
        long_cache = self._compute_cos_sin_cache(
            max_position_embeddings, long_factor, long_mscale)
        cache = jnp.concatenate([short_cache, long_cache], axis=0).astype(dtype)
        self.long_short_cos_sin_cache = cache
        # Pre-split so the kernel never lane-slices a sub-128 cos_sin block.
        h = rotary_dim // 2
        self.cos_cache = cache[:, :h]
        self.sin_cache = cache[:, h:]

    def _compute_inv_freq(self, rescale_factors):
        rescale = jnp.asarray(rescale_factors, dtype=jnp.float32)
        exps = jnp.arange(0, self.rotary_dim, 2, dtype=jnp.float32) / self.rotary_dim
        return 1.0 / (rescale * (self.base ** exps))

    def _compute_cos_sin_cache(self, max_pos, rescale_factors, mscale):
        inv_freq = self._compute_inv_freq(rescale_factors)
        t = jnp.arange(max_pos, dtype=jnp.float32)
        freqs = jnp.einsum("i,j->ij", t, inv_freq)
        cos = jnp.cos(freqs) * mscale
        sin = jnp.sin(freqs) * mscale
        return jnp.concatenate([cos, sin], axis=-1)

    def forward(self, positions, query, key, offsets=None, *, t_tile=None):
        assert key is not None
        pos = positions.reshape(-1)
        T = pos.shape[0]
        q2 = query.reshape(T, -1)
        k2 = key.reshape(T, -1)

        kmax = self.original_max_position_embeddings
        long_prompt_offset = jnp.where(
            jnp.any(pos > kmax), kmax, 0).astype(pos.dtype)
        idx = pos + long_prompt_offset
        if offsets is not None:
            idx = idx + offsets.reshape(-1)
        # TODO(synk): per-token row gather stays in JAX; a data-dependent gather
        # is not expressible as a rectangular BlockSpec window, and its traffic
        # is a few percent of q/k traffic.
        cos = jnp.take(self.cos_cache, idx, axis=0)
        sin = jnp.take(self.sin_cache, idx, axis=0)

        q_out, k_out = _rope_pallas(
            cos, sin, q2, k2, head_size=self.head_size,
            rotary_dim=self.rotary_dim, t_tile=t_tile)
        return q_out.reshape(query.shape), k_out.reshape(key.shape)


# ---------------------------------------------------------------------------
# Pure-JAX reference mirroring the PyTorch forward, for correctness check.
# ---------------------------------------------------------------------------
def _rotate_neox(x):
    h = x.shape[-1] // 2
    return jnp.concatenate([-x[..., h:], x[..., :h]], axis=-1)


def reference_forward(mod, positions, query, key):
    pos = positions.reshape(-1)
    T = pos.shape[0]
    q = query.reshape(T, -1, mod.head_size)
    k = key.reshape(T, -1, mod.head_size)
    kmax = mod.original_max_position_embeddings
    off = jnp.where(jnp.any(pos > kmax), kmax, 0).astype(pos.dtype)
    idx = pos + off
    cos_sin = mod.long_short_cos_sin_cache[idx]
    cos, sin = jnp.split(cos_sin, 2, axis=-1)
    cos = jnp.tile(cos, (1, 2))[:, None, :]
    sin = jnp.tile(sin, (1, 2))[:, None, :]
    q_rot = q[..., :mod.rotary_dim]
    q_pass = q[..., mod.rotary_dim:]
    q_rot = q_rot * cos + _rotate_neox(q_rot) * sin
    q = jnp.concatenate([q_rot, q_pass], axis=-1)
    k_rot = k[..., :mod.rotary_dim]
    k_pass = k[..., mod.rotary_dim:]
    k_rot = k_rot * cos + _rotate_neox(k_rot) * sin
    k = jnp.concatenate([k_rot, k_pass], axis=-1)
    return q.reshape(query.shape), k.reshape(key.shape)


if __name__ == "__main__":
    def run_case(name, head_size, rotary_dim, num_heads, num_kv_heads,
                 num_tokens, original_max, max_pos, t_tile=None):
        half = rotary_dim // 2
        short_factor = [1.0 + 0.05 * i for i in range(half)]
        long_factor = [1.5 + 0.10 * i for i in range(half)]
        mod = Phi3LongRoPEScaledRotaryEmbedding(
            head_size=head_size, rotary_dim=rotary_dim,
            max_position_embeddings=max_pos,
            original_max_position_embeddings=original_max,
            base=10000.0, is_neox_style=True, dtype=jnp.float32,
            short_factor=short_factor, long_factor=long_factor)

        kq, kk = jax.random.split(jax.random.PRNGKey(0))
        query = jax.random.normal(
            kq, (num_tokens, num_heads * head_size), dtype=jnp.float32)
        key = jax.random.normal(
            kk, (num_tokens, num_kv_heads * head_size), dtype=jnp.float32)
        # includes positions > original_max -> exercises the long-cache branch
        positions = (jnp.arange(num_tokens, dtype=jnp.int32) * 3) % (
            2 * original_max)

        q_out, k_out = mod.forward(positions, query, key, t_tile=t_tile)
        q_out = jax.block_until_ready(q_out)
        k_out = jax.block_until_ready(k_out)

        q_ref, k_ref = reference_forward(mod, positions, query, key)
        assert q_out.shape == query.shape and k_out.shape == key.shape, name
        assert jnp.allclose(q_out, q_ref, atol=1e-5, rtol=1e-5), name
        assert jnp.allclose(k_out, k_ref, atol=1e-5, rtol=1e-5), name

    # Case 1: full rotary, lane-aligned widths, auto tile (>=2 grid steps).
    run_case("full_rot", head_size=64, rotary_dim=64, num_heads=8,
             num_kv_heads=2, num_tokens=128, original_max=32, max_pos=128)
    # Case 2: partial rotary + forced small tile -> multi-step grid with a
    # partial (non-padded) final block.
    run_case("partial_rot_tiled", head_size=64, rotary_dim=32, num_heads=4,
             num_kv_heads=2, num_tokens=100, original_max=32, max_pos=128,
             t_tile=48)
    # Case 3: narrow widths: wq=192 (128 chunk + 64 remainder), wk=64 (<128).
    run_case("narrow_rem", head_size=64, rotary_dim=32, num_heads=3,
             num_kv_heads=1, num_tokens=40, original_max=32, max_pos=128)

    print("KERNEL_OK")
</pallas_src>

<mosaic_0001>
module attributes {stable_mosaic.version = 11 : i64} {
  func.func @_rope_kernel(%arg0: i32, %arg1: memref<64x32xf32, #tpu.memory_space<vmem>>, %arg2: memref<64x32xf32, #tpu.memory_space<vmem>>, %arg3: memref<64x512xf32, #tpu.memory_space<vmem>>, %arg4: memref<64x128xf32, #tpu.memory_space<vmem>>, %arg5: memref<64x512xf32, #tpu.memory_space<vmem>>, %arg6: memref<64x128xf32, #tpu.memory_space<vmem>>) attributes {dimension_semantics = [#tpu.dimension_semantics<parallel>], iteration_bounds = array<i64: 2>, scalar_prefetch = 0 : i64, scratch_operands = 0 : i64, tpu.core_type = #tpu.core_type<tc>, window_params = [{transform_indices = @transform_0, window_bounds = array<i64: 64, 32>}, {transform_indices = @transform_1, window_bounds = array<i64: 64, 32>}, {transform_indices = @transform_2, window_bounds = array<i64: 64, 512>}, {transform_indices = @transform_3, window_bounds = array<i64: 64, 128>}, {transform_indices = @transform_4, window_bounds = array<i64: 64, 512>}, {transform_indices = @transform_5, window_bounds = array<i64: 64, 128>}]} {
    %c0 = arith.constant 0 : index
    %c0_0 = arith.constant 0 : index
    %0 = vector.load %arg1[%c0, %c0_0] : memref<64x32xf32, #tpu.memory_space<vmem>>, vector<64x32xf32>
    %c0_1 = arith.constant 0 : index
    %c0_2 = arith.constant 0 : index
    %1 = vector.load %arg2[%c0_1, %c0_2] : memref<64x32xf32, #tpu.memory_space<vmem>>, vector<64x32xf32>
    %cst = arith.constant 0.000000e+00 : f32
    %2 = vector.broadcast %cst : f32 to vector<64x32xf32>
    %3 = arith.subf %2, %1 : vector<64x32xf32>
    %4 = tpu.concatenate %0, %0, %0, %0 in 1 : vector<64x32xf32>, vector<64x32xf32>, vector<64x32xf32>, vector<64x32xf32> -> vector<64x128xf32>
    %5 = tpu.concatenate %3, %1, %3, %1 in 1 : vector<64x32xf32>, vector<64x32xf32>, vector<64x32xf32>, vector<64x32xf32> -> vector<64x128xf32>
    %6 = tpu.iota {dimensions = array<i32: 1>} : vector<1x128xi32>
    %c64_i32 = arith.constant 64 : i32
    %c0_i32 = arith.constant 0 : i32
    %7 = arith.cmpi eq, %c64_i32, %c0_i32 : i32
    %c1_i32 = arith.constant 1 : i32
    %8 = arith.select %7, %c1_i32, %c64_i32 : i32
    %9 = vector.broadcast %8 : i32 to vector<1x128xi32>
    %10 = arith.remsi %6, %9 : vector<1x128xi32>
    %c0_i32_3 = arith.constant 0 : i32
    %11 = vector.broadcast %c0_i32_3 : i32 to vector<1x128xi32>
    %12 = arith.cmpi ne, %10, %11 : vector<1x128xi32>
    %c0_i32_4 = arith.constant 0 : i32
    %13 = vector.broadcast %c0_i32_4 : i32 to vector<1x128xi32>
    %14 = arith.cmpi slt, %10, %13 : vector<1x128xi32>
    %c0_i32_5 = arith.constant 0 : i32
    %15 = arith.cmpi slt, %8, %c0_i32_5 : i32
    %16 = vector.broadcast %15 : i1 to vector<1x128xi1>
    %17 = vector.broadcast %16 : vector<1x128xi1> to vector<1x128xi1>
    %18 = arith.xori %14, %17 : vector<1x128xi1>
    %19 = arith.andi %18, %12 : vector<1x128xi1>
    %20 = vector.broadcast %8 : i32 to vector<1x128xi32>
    %21 = arith.addi %10, %20 : vector<1x128xi32>
    %22 = arith.select %19, %21, %10 : vector<1x128xi1>, vector<1x128xi32>
    %c32_i32 = arith.constant 32 : i32
    %23 = vector.broadcast %c32_i32 : i32 to vector<1x128xi32>
    %24 = arith.cmpi sge, %22, %23 : vector<1x128xi32>
    %c0_6 = arith.constant 0 : index
    %c0_7 = arith.constant 0 : index
    %25 = vector.load %arg3[%c0_6, %c0_7] : memref<64x512xf32, #tpu.memory_space<vmem>>, vector<64x128xf32>
    %c32_i32_8 = arith.constant 32 : i32
    %26 = tpu.dynamic_rotate %25 by %c32_i32_8 dim 1 : vector<64x128xf32>, i32 -> vector<64x128xf32>
    %c96_i32 = arith.constant 96 : i32
    %27 = tpu.dynamic_rotate %25 by %c96_i32 dim 1 : vector<64x128xf32>, i32 -> vector<64x128xf32>
    %28 = vector.shape_cast %24 : vector<1x128xi1> to vector<1x128xi1>
    %29 = vector.broadcast %28 : vector<1x128xi1> to vector<64x128xi1>
    %30 = arith.select %29, %26, %27 : vector<64x128xi1>, vector<64x128xf32>
    %31 = arith.mulf %25, %4 : vector<64x128xf32>
    %32 = arith.mulf %30, %5 : vector<64x128xf32>
    %33 = arith.addf %31, %32 : vector<64x128xf32>
    %c0_9 = arith.constant 0 : index
    %c0_10 = arith.constant 0 : index
    %34 = vector.load %arg5[%c0_9, %c0_10] : memref<64x512xf32, #tpu.memory_space<vmem>>, vector<64x128xf32>
    tpu.vector_store %arg5[%c0_9, %c0_10], %33 {strides = array<i32>} : memref<64x512xf32, #tpu.memory_space<vmem>>, vector<64x128xf32>,
    %c0_11 = arith.constant 0 : index
    %c128 = arith.constant 128 : index
    %35 = vector.load %arg3[%c0_11, %c128] : memref<64x512xf32, #tpu.memory_space<vmem>>, vector<64x128xf32>
    %c32_i32_12 = arith.constant 32 : i32
    %36 = tpu.dynamic_rotate %35 by %c32_i32_12 dim 1 : vector<64x128xf32>, i32 -> vector<64x128xf32>
    %c96_i32_13 = arith.constant 96 : i32
    %37 = tpu.dynamic_rotate %35 by %c96_i32_13 dim 1 : vector<64x128xf32>, i32 -> vector<64x128xf32>
    %38 = vector.shape_cast %24 : vector<1x128xi1> to vector<1x128xi1>
    %39 = vector.broadcast %38 : vector<1x128xi1> to vector<64x128xi1>
    %40 = arith.select %39, %36, %37 : vector<64x128xi1>, vector<64x128xf32>
    %41 = arith.mulf %35, %4 : vector<64x128xf32>
    %42 = arith.mulf %40, %5 : vector<64x128xf32>
    %43 = arith.addf %41, %42 : vector<64x128xf32>
    %c0_14 = arith.constant 0 : index
    %c128_15 = arith.constant 128 : index
    %44 = vector.load %arg5[%c0_14, %c128_15] : memref<64x512xf32, #tpu.memory_space<vmem>>, vector<64x128xf32>
    tpu.vector_store %arg5[%c0_14, %c128_15], %43 {strides = array<i32>} : memref<64x512xf32, #tpu.memory_space<vmem>>, vector<64x128xf32>,
    %c0_16 = arith.constant 0 : index
    %c256 = arith.constant 256 : index
    %45 = vector.load %arg3[%c0_16, %c256] : memref<64x512xf32, #tpu.memory_space<vmem>>, vector<64x128xf32>
    %c32_i32_17 = arith.constant 32 : i32
    %46 = tpu.dynamic_rotate %45 by %c32_i32_17 dim 1 : vector<64x128xf32>, i32 -> vector<64x128xf32>
    %c96_i32_18 = arith.constant 96 : i32
    %47 = tpu.dynamic_rotate %45 by %c96_i32_18 dim 1 : vector<64x128xf32>, i32 -> vector<64x128xf32>
    %48 = vector.shape_cast %24 : vector<1x128xi1> to vector<1x128xi1>
    %49 = vector.broadcast %48 : vector<1x128xi1> to vector<64x128xi1>
    %50 = arith.select %49, %46, %47 : vector<64x128xi1>, vector<64x128xf32>
    %51 = arith.mulf %45, %4 : vector<64x128xf32>
    %52 = arith.mulf %50, %5 : vector<64x128xf32>
    %53 = arith.addf %51, %52 : vector<64x128xf32>
    %c0_19 = arith.constant 0 : index
    %c256_20 = arith.constant 256 : index
    %54 = vector.load %arg5[%c0_19, %c256_20] : memref<64x512xf32, #tpu.memory_space<vmem>>, vector<64x128xf32>
    tpu.vector_store %arg5[%c0_19, %c256_20], %53 {strides = array<i32>} : memref<64x512xf32, #tpu.memory_space<vmem>>, vector<64x128xf32>,
    %c0_21 = arith.constant 0 : index
    %c384 = arith.constant 384 : index
    %55 = vector.load %arg3[%c0_21, %c384] : memref<64x512xf32, #tpu.memory_space<vmem>>, vector<64x128xf32>
    %c32_i32_22 = arith.constant 32 : i32
    %56 = tpu.dynamic_rotate %55 by %c32_i32_22 dim 1 : vector<64x128xf32>, i32 -> vector<64x128xf32>
    %c96_i32_23 = arith.constant 96 : i32
    %57 = tpu.dynamic_rotate %55 by %c96_i32_23 dim 1 : vector<64x128xf32>, i32 -> vector<64x128xf32>
    %58 = vector.shape_cast %24 : vector<1x128xi1> to vector<1x128xi1>
    %59 = vector.broadcast %58 : vector<1x128xi1> to vector<64x128xi1>
    %60 = arith.select %59, %56, %57 : vector<64x128xi1>, vector<64x128xf32>
    %61 = arith.mulf %55, %4 : vector<64x128xf32>
    %62 = arith.mulf %60, %5 : vector<64x128xf32>
    %63 = arith.addf %61, %62 : vector<64x128xf32>
    %c0_24 = arith.constant 0 : index
    %c384_25 = arith.constant 384 : index
    %64 = vector.load %arg5[%c0_24, %c384_25] : memref<64x512xf32, #tpu.memory_space<vmem>>, vector<64x128xf32>
    tpu.vector_store %arg5[%c0_24, %c384_25], %63 {strides = array<i32>} : memref<64x512xf32, #tpu.memory_space<vmem>>, vector<64x128xf32>,
    %c0_26 = arith.constant 0 : index
    %c0_27 = arith.constant 0 : index
    %65 = vector.load %arg4[%c0_26, %c0_27] : memref<64x128xf32, #tpu.memory_space<vmem>>, vector<64x128xf32>
    %c32_i32_28 = arith.constant 32 : i32
    %66 = tpu.dynamic_rotate %65 by %c32_i32_28 dim 1 : vector<64x128xf32>, i32 -> vector<64x128xf32>
    %c96_i32_29 = arith.constant 96 : i32
    %67 = tpu.dynamic_rotate %65 by %c96_i32_29 dim 1 : vector<64x128xf32>, i32 -> vector<64x128xf32>
    %68 = vector.shape_cast %24 : vector<1x128xi1> to vector<1x128xi1>
    %69 = vector.broadcast %68 : vector<1x128xi1> to vector<64x128xi1>
    %70 = arith.select %69, %66, %67 : vector<64x128xi1>, vector<64x128xf32>
    %71 = arith.mulf %65, %4 : vector<64x128xf32>
    %72 = arith.mulf %70, %5 : vector<64x128xf32>
    %73 = arith.addf %71, %72 : vector<64x128xf32>
    %c0_30 = arith.constant 0 : index
    %c0_31 = arith.constant 0 : index
    %74 = vector.load %arg6[%c0_30, %c0_31] : memref<64x128xf32, #tpu.memory_space<vmem>>, vector<64x128xf32>
    tpu.vector_store %arg6[%c0_30, %c0_31], %73 {strides = array<i32>} : memref<64x128xf32, #tpu.memory_space<vmem>>, vector<64x128xf32>,
    return
  }
  func.func @transform_0(%arg0: i32) -> (i32, i32) {
    %c0_i32 = arith.constant 0 : i32
    %c0_i32_0 = arith.constant 0 : i32
    return %arg0, %c0_i32 : i32, i32
  }
  func.func @transform_1(%arg0: i32) -> (i32, i32) {
    %c0_i32 = arith.constant 0 : i32
    %c0_i32_0 = arith.constant 0 : i32
    return %arg0, %c0_i32 : i32, i32
  }
  func.func @transform_2(%arg0: i32) -> (i32, i32) {
    %c0_i32 = arith.constant 0 : i32
    %c0_i32_0 = arith.constant 0 : i32
    return %arg0, %c0_i32 : i32, i32
  }
  func.func @transform_3(%arg0: i32) -> (i32, i32) {
    %c0_i32 = arith.constant 0 : i32
    %c0_i32_0 = arith.constant 0 : i32
    return %arg0, %c0_i32 : i32, i32
  }
  func.func @transform_4(%arg0: i32) -> (i32, i32) {
    %c0_i32 = arith.constant 0 : i32
    %c0_i32_0 = arith.constant 0 : i32
    return %arg0, %c0_i32 : i32, i32
  }
  func.func @transform_5(%arg0: i32) -> (i32, i32) {
    %c0_i32 = arith.constant 0 : i32
    %c0_i32_0 = arith.constant 0 : i32
    return %arg0, %c0_i32 : i32, i32
  }
}

</mosaic_0001>

<bundles_post_ra>
// kernel: tpu_custom_call.1
= control target key start
LH: loop header
LB: loop body
LE: loop exit
PB: predicated region body
PF: predicated region fallthrough
CT: control target
= control target key end

     0   :  { %11 = vsyncpa [#allocation3], 0  ;;  %s2522_s0 = inlined_call_operand.vmem [shape: f32[128,32], index: 0, kind: input, shape index: {}]   ;;  %s2523_s1 = inlined_call_operand.vmem [shape: f32[128,32], index: 1, kind: input, shape index: {}]   ;;  %s2524_s2 = inlined_call_operand.hbm [shape: f32[128,512], index: 2, kind: input, shape index: {}]   ;;  %s2525_s3 = inlined_call_operand.vmem [shape: f32[128,128], index: 3, kind: input, shape index: {}]   ;;  %s2526_s4 = inlined_call_operand.hbm [shape: f32[128,512], index: 4, kind: output, shape index: {0}]   ;;  %s2527_s5 = inlined_call_operand.hbm [shape: f32[128,128], index: 5, kind: output, shape index: {1}]  }
   0x1   :  { %13 = vsyncpa [#allocation3 + $0x1], 0 }
   0x2   :  { %14 = vsyncpa [#allocation4], 0 }
   0x3   :  { %16 = vsyncpa [#allocation4 + $0x1], 0 }
   0x4   :  { %17 = vsyncpa [#allocation7], 0 }
   0x5   :  { %19 = vsyncpa [#allocation7 + $0x1], 0  ;;  %s1416_s18 = smov 0   ;;  %s1418_s19 = smov 0  }
   0x6   :  { %s1420_s20 = smov 0   ;;  %s1422_s21 = smov 0  }
   0x7 LB: > { %s1437_s22 = sadd.s32 4294967295, %s1373_s21   ;;  %s1161_s23 = sadd.s32 4294967294, %s1373_s21   ;;  %s1373_s21 = sphi %s1422_s21, %s2633_s21   ;;  %s1369_s20 = sphi %s1420_s20, %s2632_s20   ;;  %s1365_s19 = sphi %s1418_s19, %s2631_s19   ;;  %s1361_s18 = sphi %s1416_s18, %s2630_s18  }
   0x8   : > { %s1441_s24 = sadd.s32 1, %s1373_s21   ;;  %s84_s25 = sadd.s32 1, %s1369_s20 }
   0x9   : > { %s81_s26 = ssub.s32 %s1373_s21, %s1441_s24  ;;  %p91_p0 = scmp.ne.s32.totalorder %s1369_s20, %s1365_s19 }
   0xa   : > { %p82_p1 = scmp.eq.s32.totalorder %s81_s26, 0  ;;  %p92_p2 = scmp.eq.s32.totalorder %s1373_s21, 0 }
   0xb   : > { %p97_p3 = scmp.ne.s32.totalorder %s1365_s19, %s1361_s18  ;;  %p98_p4 = scmp.eq.s32.totalorder %s1437_s22, 0 }
   0xc   : > { %s1453_s27 = scalar_select %p82_p1, %s1369_s20, %s84_s25  }
   0xd   : > { %p1455_p5 = por %p92_p2, %p91_p0  ;;  %p1459_p6 = por %p98_p4, %p97_p3 }
   0xe   : > { %p147_p7 = scmp.eq.s32.totalorder %s1437_s22, 1  ;;  %p153_p8 = scmp.eq.s32.totalorder %s1161_s23, 1 }
   0xf   : > { %s2554_s29 = scalar_select %p1459_p6, 1, 0 }
  0x10   : > { %p1209_p10 = scmp.lt.s32.totalorder %s1373_s21, 2  ;;  %p1466_p11 = por %p147_p7, %p91_p0 }
  0x11   : > { %p1470_p12 = por %p153_p8, %p97_p3  ;;  %s217_s7 = sand.u32 1, %s1369_s20  }
  0x12   : > { %s2555_s30 = scalar_select %p1466_p11, 1, 0 }
  0x13   : > { %s2556_s6 = scalar_select %p1470_p12, 1, 0 }
  0x14   : > { %s1188_s8 = sshll.u32 %s1373_s21, 12  ;;  %s1164_s9 = sshll.u32 %s217_s7, 8 }
  0x15   : > { %s1479_s12 = scalar_lea.hbm %s2524_s2, %s1188_s8  ;;  %s221_s13 = scalar_lea.vmem [#allocation2], %s1164_s9 }
  0x16   : > { %s229_s14 = sshll.u32 %s221_s13, 4  ;;  %p1483_p13 = pnand %p1209_p10, %p1455_p5  ;;  %s1487_s14 = int_to_ptr.vmem [resolvable:$true] %s229_s14 }
  0x17   : > { %s1489_s16 = scalar_lea.sflag [#allocation3], %s217_s7  ;;  %s1251_s17 = scalar_lea.hbm %s1479_s12, 4096 }
  0x18   : > { %p1252_p0 = scmp.ne.s32.totalorder %s1479_s12, %s1251_s17  ;;  %p1253_p1 = pneg %p1483_p13 }
  0x19   : > { %s1256_s26 = scalar_lea.hbm %s2524_s2, 8192  ;;  %p1257_p4 = scmp.lt.s32.totalorder %s1479_s12, %s2524_s2 }
  0x1a   : > { %p1254_p2 = pnand %p1253_p1, %p1252_p0  ;;  %p1258_p5 = scmp.lt.s32.totalorder %s1256_s26, %s1251_s17 }
  0x1c   : > { %p1255_p3 = pneg %p1254_p2  ;;  %p1259_p7 = por %p1258_p5, %p1257_p4 }
  0x1e   : > { %p1260_p8 = pnand %p1259_p7, %p1255_p3 }
  0x20   : > { %1263 = shalt.err (!%p1260_p8)
}
  0x21   : > { %s1264_s7 = scalar_lea.vmem %s1487_s14, 4096  ;;  %s1375_s9 = smov [#allocation2]  }
  0x22   : > { %p1265_p10 = scmp.ne.s32.totalorder %s1487_s14, %s1264_s7  ;;  %s1269_s10 = sshll.u32 %s1375_s9, 4  ;;  %s1270_s10 = int_to_ptr.vmem [resolvable:$false] %s1269_s10 }
  0x23   : > { %s1271_s11 = scalar_lea.vmem %s1270_s10, 8192  ;;  %p1272_p2 = scmp.lt.s32.totalorder %s1487_s14, %s1270_s10 }
  0x24   : > { %p1267_p9 = pnand %p1265_p10, %p1253_p1  ;;  %p1273_p12 = scmp.lt.s32.totalorder %s1271_s11, %s1264_s7 }
  0x26   : > { %p1268_p0 = pneg %p1267_p9  ;;  %p1274_p11 = por %p1273_p12, %p1272_p2 }
  0x28   : > { %p1275_p6 = pnand %p1274_p11, %p1268_p0 }
  0x2a   : > { %1278 = shalt.err (!%p1275_p6)
}
  0x2b   : > { %s1376_s13 = smov 512   ;;  %s1377_s17 = smov 32  }
  0x2c   : > { %1201 = dma.hbm_to_vmem [thread:$0]  (!%p1483_p13), %s1479_s12, 4096, %s1487_s14, %s1489_s16, %s1376_s13, %s1376_s13, %s1377_s17  }
  0x2d   : > { %p1168_p9 = scmp.ge.s32.totalorder %s1373_s21, 1  ;;  %p246_p1 = scmp.lt.s32.totalorder %s1373_s21, 3 }
  0x2f   : > { %p247_p3 = pnand %p1168_p9, %p246_p1 }
  0x31   : > { %250 = sbr.rel (%p247_p3) target bundleno = 461 (0x1cd), region = 36 }
  0x36   : > { %s1513_s23 = sand.u32 1, %s1365_s19   ;;  %p2558_p6 = scmp.ne.s32.totalorder %s2554_s29, 0 }
  0x37   : > { %s1169_s25 = sshll.u32 %s1513_s23, 8  ;;  %s253_s26 = scalar_lea.sflag [#allocation3], %s1513_s23 }
  0x38   : > { %s1519_s28 = scalar_lea.vmem [#allocation2], %s1169_s25 }
  0x39   : > { %1348 = dma.done.wait (%p2558_p6), %s253_s26, 4096  }
  0x3a   : > { %1350 = vsyncadd (%p2558_p6), %s253_s26, 4294963200  ;;  %s1172_s12 = sshll.u32 %s1437_s22, 3  ;;  %s1378_s7 = smov 32   ;;  %v1681_v24 = vld [vmem:[%s1519_s28 + $0x20] sm:$0xff]  ;;  %v1741_v38 = vld [vmem:[%s1519_s28 + $0x28] sm:$0xff]  ;;  %vm428_vm0 = vcmask 261120  }
  0x3b   : > { %p304_p11 = scmp.lt.s32.totalorder %s1172_s12, 15  ;;  %s1379_s29 = smov 64   ;;  %v1684_v25 = vld [vmem:[%s1519_s28] sm:$0xff]  ;;  %2560 = vst [vmem:[#allocation12_spill] sm:$0xff] %v1741_v38  ;;  %v1744_v39 = vld [vmem:[%s1519_s28 + $0x8] sm:$0xff]  ;;  %vm437_vm1 = vcmask 523264  }
  0x3c   : > { %s1380_s9 = smov 96   ;;  %v1691_v26 = vld [vmem:[%s1519_s28 + $0x60] sm:$0xff]  ;;  %2561 = vst [vmem:[#allocation13_spill] sm:$0xff] %v1744_v39  ;;  %v1755_v42 = vld [vmem:[%s1519_s28 + $0x68] sm:$0xff]  ;;  %vm446_vm2 = vcmask 785408   ;;  %v1797_v58 = vld [vmem:[%s1519_s28 + $0x30] sm:$0xff] }
  0x3d   : > { %s2635_s12 = smov (!%p304_p11, %s1172_s12), 15  ;;  %v1694_v27 = vld [vmem:[%s1519_s28 + $0x40] sm:$0xff]  ;;  %2562 = vst [vmem:[#allocation14_spill] sm:$0xff] %v1755_v42  ;;  %v1758_v43 = vld [vmem:[%s1519_s28 + $0x48] sm:$0xff]  ;;  %v1800_v59 = vld [vmem:[%s1519_s28 + $0x10] sm:$0xff]  ;;  %p2627_p13 = scmp.ne.s32.totalorder %s2555_s30, 0 }
  0x3e   : > { %s1526_s14 = sshll.u32 %s2635_s12, 3  ;;  %v1701_v28 = vld [vmem:[%s1519_s28 + $0xa0] sm:$0xff]  ;;  %2563 = vst [vmem:[#allocation15_spill] sm:$0xff] %v1758_v43  ;;  %v1765_v46 = vld [vmem:[%s1519_s28 + $0xa8] sm:$0xff]  ;;  %v1803_v60 = vld [vmem:[%s1519_s28 + $0x38] sm:$0xff]  ;;  %s2152_s12 = scalar_lea.vmem [#allocation5], %s1169_s25 }
  0x3f   : > { %s307_s8 = scalar_lea.vmem %s2522_s0, %s1526_s14  ;;  %s313_s13 = scalar_lea.vmem %s2523_s1, %s1526_s14  ;;  %v1704_v29 = vld [vmem:[%s1519_s28 + $0x80] sm:$0xff]  ;;  %2564 = vst [vmem:[#allocation16_spill] sm:$0xff] %v1765_v46  ;;  %v1768_v47 = vld [vmem:[%s1519_s28 + $0x88] sm:$0xff] }
  0x40   : > { %v1532_v0 = vld [vmem:[%s307_s8 + $0x10] sm:$0xff]  ;;  %v1534_v1 = vld [vmem:[%s307_s8] sm:$0xff]  ;;  %v1540_v2 = vld [vmem:[%s307_s8 + $0x18] sm:$0xff]  ;;  %2565 = vst [vmem:[#allocation17_spill] sm:$0xff] %v1768_v47  ;;  %s1190_s25 = sshll.u32 %s1437_s22, 12  ;;  %s1381_s10 = smov [#allocation5]  }
  0x41   : > { %360 = vrot.lane.b32.xlu1 %v1532_v0, %s1378_s7  ;;  %356 = vrot.lane.b32.xlu0 %v1534_v1, %s1378_s7  ;;  %v1542_v3 = vld [vmem:[%s307_s8 + $0x8] sm:$0xff]  ;;  %v1550_v5 = vld [vmem:[%s307_s8 + $0x20] sm:$0xff]  ;;  %s1283_s11 = sshll.u32 %s1381_s10, 4  ;;  %s1284_s11 = int_to_ptr.vmem [resolvable:$false] %s1283_s11 }
  0x42   : > { %v1548_v4 = vld [vmem:[%s307_s8 + $0x28] sm:$0xff]  ;;  %v1556_v6 = vld [vmem:[%s307_s8 + $0x38] sm:$0xff]  ;;  %v1558_v7 = vld [vmem:[%s307_s8 + $0x30] sm:$0xff]  ;;  %s2389_s8 = scalar_lea.hbm %s2526_s4, %s1190_s25 }
  0x43   : > { %v1600_v8 = vld [vmem:[%s313_s13 + $0x8] sm:$0xff]  ;;  %v1602_v9 = vld [vmem:[%s313_s13] sm:$0xff]  ;;  %v1608_v10 = vld [vmem:[%s313_s13 + $0x18] sm:$0xff] }
  0x44   : > { %v1610_v11 = vld [vmem:[%s313_s13 + $0x10] sm:$0xff]  ;;  %v1616_v12 = vld [vmem:[%s313_s13 + $0x28] sm:$0xff]  ;;  %v1618_v13 = vld [vmem:[%s313_s13 + $0x20] sm:$0xff]  ;;  %v2537_v16 = vsub.f32 0.0, %v1600_v8  ;;  %v2536_v17 = vsub.f32 0.0, %v1602_v9  ;;  %v2535_v18 = vsub.f32 0.0, %v1608_v10 }
  0x45   : > { %362 = vrot.lane.b32.xlu1 %v1540_v2, %s1378_s7  ;;  %358 = vrot.lane.b32.xlu0 %v1542_v3, %s1378_s7  ;;  %v1624_v14 = vld [vmem:[%s313_s13 + $0x38] sm:$0xff]  ;;  %v1626_v15 = vld [vmem:[%s313_s13 + $0x30] sm:$0xff]  ;;  %v2534_v19 = vsub.f32 0.0, %v1610_v11  ;;  %v2533_v20 = vsub.f32 0.0, %v1616_v12  ;;  %v2532_v21 = vsub.f32 0.0, %v1618_v13  ;;  %s1285_s13 = scalar_lea.vmem %s1284_s11, 8192 }
  0x46   : > { %v2531_v22 = vsub.f32 0.0, %v1624_v14  ;;  %v2530_v23 = vsub.f32 0.0, %v1626_v15  ;;  %v1711_v30 = vld [vmem:[%s1519_s28 + $0xe0] sm:$0xff]  ;;  %v1775_v50 = vld [vmem:[%s1519_s28 + $0xe8] sm:$0xff] }
  0x47   : > { %v1714_v31 = vld [vmem:[%s1519_s28 + $0xc0] sm:$0xff]  ;;  %2566 = vst [vmem:[#allocation18_spill] sm:$0xff] %v1775_v50  ;;  %v1778_v51 = vld [vmem:[%s1519_s28 + $0xc8] sm:$0xff] }
  0x48   : > { %2559 = vst [vmem:[#allocation11_spill] sm:$0xff] %v1714_v31  ;;  %2567 = vst [vmem:[#allocation19_spill] sm:$0xff] %v1778_v51 }
  0x49   : > { %366 = vrot.lane.b32.xlu1 %v1548_v4, %s1378_s7  ;;  %364 = vrot.lane.b32.xlu0 %v1550_v5, %s1378_s7 }
  0x4d   : > { %370 = vrot.lane.b32.xlu1 %v1556_v6, %s1378_s7  ;;  %368 = vrot.lane.b32.xlu0 %v1558_v7, %s1378_s7 }
  0x51   : > { %382 = vrot.lane.b32.xlu1 %v1542_v3, %s1379_s29  ;;  %380 = vrot.lane.b32.xlu0 %v1534_v1, %s1379_s29 }
  0x55   : > { %386 = vrot.lane.b32.xlu1 %v1540_v2, %s1379_s29  ;;  %384 = vrot.lane.b32.xlu0 %v1532_v0, %s1379_s29 }
  0x59   : > { %390 = vrot.lane.b32.xlu1 %v1548_v4, %s1379_s29  ;;  %388 = vrot.lane.b32.xlu0 %v1550_v5, %s1379_s29 }
  0x5d   : > { %394 = vrot.lane.b32.xlu1 %v1556_v6, %s1379_s29  ;;  %392 = vrot.lane.b32.xlu0 %v1558_v7, %s1379_s29 }
  0x61   : > { %406 = vrot.lane.b32.xlu1 %v1542_v3, %s1380_s9  ;;  %404 = vrot.lane.b32.xlu0 %v1534_v1, %s1380_s9 }
  0x65   : > { %410 = vrot.lane.b32.xlu1 %v1540_v2, %s1380_s9  ;;  %408 = vrot.lane.b32.xlu0 %v1532_v0, %s1380_s9 }
  0x69   : > { %414 = vrot.lane.b32.xlu1 %v1548_v4, %s1380_s9  ;;  %412 = vrot.lane.b32.xlu0 %v1550_v5, %s1380_s9 }
  0x6d   : > { %418 = vrot.lane.b32.xlu1 %v1556_v6, %s1380_s9  ;;  %416 = vrot.lane.b32.xlu0 %v1558_v7, %s1380_s9 }
  0x71   : > { %465 = vrot.lane.b32.xlu1 %v1600_v8, %s1378_s7  ;;  %463 = vrot.lane.b32.xlu0 %v1602_v9, %s1378_s7 }
  0x75   : > { %469 = vrot.lane.b32.xlu1 %v1608_v10, %s1378_s7  ;;  %467 = vrot.lane.b32.xlu0 %v1610_v11, %s1378_s7 }
  0x79   : > { %473 = vrot.lane.b32.xlu1 %v1616_v12, %s1378_s7  ;;  %471 = vrot.lane.b32.xlu0 %v1618_v13, %s1378_s7 }
  0x7d   : > { %477 = vrot.lane.b32.xlu1 %v1624_v14, %s1378_s7  ;;  %475 = vrot.lane.b32.xlu0 %v1626_v15, %s1378_s7 }
  0x81   : > { %497 = vrot.lane.b32.xlu1 %v2537_v16, %s1379_s29  ;;  %495 = vrot.lane.b32.xlu0 %v2536_v17, %s1379_s29  ;;  %v1894_v16 = vld [vmem:[%s1519_s28 + $0x98] sm:$0xff] }
  0x85   : > { %501 = vrot.lane.b32.xlu1 %v2535_v18, %s1379_s29  ;;  %499 = vrot.lane.b32.xlu0 %v2534_v19, %s1379_s29  ;;  %v1889_v19 = vld [vmem:[%s1519_s28 + $0xb8] sm:$0xff] }
  0x89   : > { %505 = vrot.lane.b32.xlu1 %v2533_v20, %s1379_s29  ;;  %503 = vrot.lane.b32.xlu0 %v2532_v21, %s1379_s29 }
  0x8d   : > { %509 = vrot.lane.b32.xlu1 %v2531_v22, %s1379_s29  ;;  %507 = vrot.lane.b32.xlu0 %v2530_v23, %s1379_s29  ;;  %v1808_v22 = vld [vmem:[%s1519_s28 + $0x18] sm:$0xff]  ;;  %s985_s29 = scalar_lea.sflag [#allocation4], %s1513_s23 }
  0x91   : > { %521 = vrot.lane.b32.xlu1 %v1600_v8, %s1380_s9  ;;  %519 = vrot.lane.b32.xlu0 %v1602_v9, %s1380_s9 }
  0x95   : > { %525 = vrot.lane.b32.xlu1 %v1608_v10, %s1380_s9  ;;  %523 = vrot.lane.b32.xlu0 %v1610_v11, %s1380_s9 }
  0x99   : > { %529 = vrot.lane.b32.xlu1 %v1616_v12, %s1380_s9  ;;  %527 = vrot.lane.b32.xlu0 %v1618_v13, %s1380_s9 }
  0x9d   : > { %533 = vrot.lane.b32.xlu1 %v1624_v14, %s1380_s9  ;;  %531 = vrot.lane.b32.xlu0 %v1626_v15, %s1380_s9 }
  0xa1   : > { %592 = vrot.lane.b32.xlu1 %v1681_v24, %s1378_s7  ;;  %590 = vrot.lane.b32.xlu0 %v1684_v25, %s1378_s7 }
  0xa5   : > { %596 = vrot.lane.b32.xlu1 %v1691_v26, %s1378_s7  ;;  %594 = vrot.lane.b32.xlu0 %v1694_v27, %s1378_s7 }
  0xa9   : > { %600 = vrot.lane.b32.xlu1 %v1701_v28, %s1378_s7  ;;  %598 = vrot.lane.b32.xlu0 %v1704_v29, %s1378_s7 }
  0xad   : > { %604 = vrot.lane.b32.xlu1 %v1711_v30, %s1378_s7  ;;  %602 = vrot.lane.b32.xlu0 %v1714_v31, %s1378_s7 }
  0xb1   : > { %608 = vrot.lane.b32.xlu1 %v1681_v24, %s1380_s9  ;;  %606 = vrot.lane.b32.xlu0 %v1684_v25, %s1380_s9 }
  0xb3   : > { %v361_v32 = vpop.permute.xlu1 %360  ;;  %v357_v33 = vpop.permute.xlu0 %356 }
  0xb4   : > { %v429_v56 = vsel %vm428_vm0, %v1534_v1, %v357_v33 }
  0xb5   : > { %612 = vrot.lane.b32.xlu1 %v1691_v26, %s1380_s9  ;;  %610 = vrot.lane.b32.xlu0 %v1694_v27, %s1380_s9 }
  0xb7   : > { %v363_v34 = vpop.permute.xlu1 %362  ;;  %v359_v35 = vpop.permute.xlu0 %358 }
  0xb8   : > { %v430_v57 = vsel %vm428_vm0, %v1542_v3, %v359_v35 }
  0xb9   : > { %616 = vrot.lane.b32.xlu1 %v1701_v28, %s1380_s9  ;;  %614 = vrot.lane.b32.xlu0 %v1704_v29, %s1380_s9 }
  0xbb   : > { %v1732_v36 = vpop.permute.xlu1 %366  ;;  %v1734_v37 = vpop.permute.xlu0 %364 }
  0xbd   : > { %620 = vrot.lane.b32.xlu1 %v1711_v30, %s1380_s9  ;;  %618 = vrot.lane.b32.xlu0 %v1714_v31, %s1380_s9 }
  0xbf   : > { %v1746_v40 = vpop.permute.xlu1 %370  ;;  %v1748_v41 = vpop.permute.xlu0 %368 }
  0xc1   : > { %674 = vrot.lane.b32.xlu1 %v1741_v38, %s1378_s7  ;;  %672 = vrot.lane.b32.xlu0 %v1744_v39, %s1378_s7 }
  0xc3   : > { %v383_v44 = vpop.permute.xlu1 %382  ;;  %v381_v45 = vpop.permute.xlu0 %380 }
  0xc4   : > { %v439_v61 = vsel %vm437_vm1, %v430_v57, %v383_v44  ;;  %v438_v62 = vsel %vm437_vm1, %v429_v56, %v381_v45  ;;  %v432_v45 = vsel %vm428_vm0, %v1540_v2, %v363_v34  ;;  %v1837_v56 = vld [vmem:[%s1519_s28 + $0x70] sm:$0xff]  ;;  %v1852_v2 = vld [vmem:[%s1519_s28 + $0x58] sm:$0xff] }
  0xc5   : > { %678 = vrot.lane.b32.xlu1 %v1755_v42, %s1378_s7  ;;  %676 = vrot.lane.b32.xlu0 %v1758_v43, %s1378_s7  ;;  %v1840_v57 = vld [vmem:[%s1519_s28 + $0x50] sm:$0xff] }
  0xc7   : > { %v387_v48 = vpop.permute.xlu1 %386  ;;  %v385_v49 = vpop.permute.xlu0 %384 }
  0xc9   : > { %682 = vrot.lane.b32.xlu1 %v1765_v46, %s1378_s7  ;;  %680 = vrot.lane.b32.xlu0 %v1768_v47, %s1378_s7 }
  0xcb   : > { %v391_v52 = vpop.permute.xlu1 %390  ;;  %v389_v53 = vpop.permute.xlu0 %388 }
  0xcd   : > { %686 = vrot.lane.b32.xlu1 %v1775_v50, %s1378_s7  ;;  %684 = vrot.lane.b32.xlu0 %v1778_v51, %s1378_s7 }
  0xcf   : > { %v1784_v54 = vpop.permute.xlu1 %394  ;;  %v1786_v55 = vpop.permute.xlu0 %392 }
  0xd1   : > { %690 = vrot.lane.b32.xlu1 %v1741_v38, %s1380_s9  ;;  %688 = vrot.lane.b32.xlu0 %v1744_v39, %s1380_s9  ;;  %v2591_v39 = vsub.f32 0.0, %v1602_v9 }
  0xd3   : > { %v407_v63 = vpop.permute.xlu1 %406  ;;  %v405_v23 = vpop.permute.xlu0 %404 }
  0xd4   : > { %v1811_v1 = vsel %vm446_vm2, %v439_v61, %v407_v63  ;;  %v1814_v3 = vsel %vm446_vm2, %v438_v62, %v405_v23  ;;  %v431_v23 = vsel %vm428_vm0, %v1532_v0, %v361_v32  ;;  %v1847_v62 = vld [vmem:[%s1519_s28 + $0x78] sm:$0xff]  ;;  %v441_v63 = vsel %vm437_vm1, %v432_v45, %v387_v48 }
  0xd5   : > { %694 = vrot.lane.b32.xlu1 %v1755_v42, %s1380_s9  ;;  %692 = vrot.lane.b32.xlu0 %v1758_v43, %s1380_s9  ;;  %v1822_v33 = vmul.f32 %v1797_v58, %v1811_v1  ;;  %v1826_v35 = vmul.f32 %v1800_v59, %v1814_v3  ;;  %v1830_v44 = vmul.f32 %v1803_v60, %v1811_v1 }
  0xd6   : > { %v1844_v61 = vmul.f32 %v1808_v22, %v1814_v3  ;;  %v440_v21 = vsel %vm437_vm1, %v431_v23, %v385_v49  ;;  %v433_v45 = vsel %vm428_vm0, %v1550_v5, %v1734_v37 }
  0xd7   : > { %2568 = vst [vmem:[#allocation20_spill] sm:$0xff] %v1822_v33  ;;  %2569 = vst [vmem:[#allocation21_spill] sm:$0xff] %v1826_v35  ;;  %v411_v0 = vpop.permute.xlu1 %410  ;;  %v409_v32 = vpop.permute.xlu0 %408  ;;  %v442_v17 = vsel %vm437_vm1, %v433_v45, %v389_v53  ;;  %v751_v45 = vld [vmem:[%s1519_s28 + $0xf0] sm:$0xff] }
  0xd8   : > { %2570 = vst [vmem:[#allocation22_spill] sm:$0xff] %v1830_v44  ;;  %2571 = vst [vmem:[#allocation23_spill] sm:$0xff] %v1844_v61  ;;  %v1855_v34 = vsel %vm446_vm2, %v441_v63, %v411_v0  ;;  %v1858_v20 = vsel %vm446_vm2, %v440_v21, %v409_v32  ;;  %v434_v21 = vsel %vm428_vm0, %v1548_v4, %v1732_v36  ;;  %v749_v63 = vld [vmem:[%s1519_s28 + $0xb0] sm:$0xff] }
  0xd9   : > { %698 = vrot.lane.b32.xlu1 %v1765_v46, %s1380_s9  ;;  %696 = vrot.lane.b32.xlu0 %v1768_v47, %s1380_s9  ;;  %v1866_v48 = vmul.f32 %v1837_v56, %v1855_v34  ;;  %v1870_v49 = vmul.f32 %v1840_v57, %v1858_v20  ;;  %v1874_v23 = vmul.f32 %v1847_v62, %v1855_v34  ;;  %v748_v0 = vld [vmem:[%s1519_s28 + $0x90] sm:$0xff]  ;;  %v567_v47 = vlaneseq }
  0xda   : > { %v1886_v32 = vmul.f32 %v1852_v2, %v1858_v20  ;;  %v443_v18 = vsel %vm437_vm1, %v434_v21, %v391_v52  ;;  %v435_v21 = vsel %vm428_vm0, %v1558_v7, %v1748_v41 }
  0xdb   : > { %2572 = vst [vmem:[#allocation24_spill] sm:$0xff] %v1866_v48  ;;  %2573 = vst [vmem:[#allocation25_spill] sm:$0xff] %v1870_v49  ;;  %v415_v4 = vpop.permute.xlu1 %414  ;;  %v413_v36 = vpop.permute.xlu0 %412 }
  0xdc   : > { %2574 = vst [vmem:[#allocation26_spill] sm:$0xff] %v1874_v23  ;;  %2575 = vst [vmem:[#allocation27_spill] sm:$0xff] %v1886_v32  ;;  %v1897_v5 = vsel %vm446_vm2, %v443_v18, %v415_v4  ;;  %v1900_v37 = vsel %vm446_vm2, %v442_v17, %v413_v36  ;;  %v436_v17 = vsel %vm428_vm0, %v1556_v6, %v1746_v40  ;;  %v750_v4 = vld [vmem:[%s1519_s28 + $0xd0] sm:$0xff]  ;;  %v1929_v32 = vld [vmem:[%s1519_s28 + $0xf8] sm:$0xff] }
  0xdd   : > { %702 = vrot.lane.b32.xlu1 %v1775_v50, %s1380_s9  ;;  %700 = vrot.lane.b32.xlu0 %v1778_v51, %s1380_s9  ;;  %v1907_v52 = vmul.f32 %v749_v63, %v1897_v5  ;;  %v1910_v53 = vmul.f32 %v748_v0, %v1900_v37  ;;  %v1914_v18 = vmul.f32 %v1889_v19, %v1897_v5  ;;  %v1936_v40 = vld [vmem:[%s1519_s28 + $0xd8] sm:$0xff]  ;;  %s2062_s28 = scalar_lea.vmem %s2525_s3, %s1526_s14  ;;  %s1004_s14 = sshll.u32 %s2152_s12, 4  ;;  %s2393_s14 = int_to_ptr.vmem [resolvable:$true] %s1004_s14 }
  0xde   : > { %v1926_v36 = vmul.f32 %v1894_v16, %v1900_v37  ;;  %v445_v23 = vsel %vm437_vm1, %v436_v17, %v1784_v54  ;;  %p1286_p7 = scmp.lt.s32.totalorder %s2393_s14, %s1284_s11 }
  0xdf   : > { %2576 = vst [vmem:[#allocation28_spill] sm:$0xff] %v1907_v52  ;;  %2577 = vst [vmem:[#allocation29_spill] sm:$0xff] %v1910_v53  ;;  %v419_v61 = vpop.permute.xlu1 %418  ;;  %v417_v6 = vpop.permute.xlu0 %416 }
  0xe0   : > { %2578 = vst [vmem:[#allocation30_spill] sm:$0xff] %v1914_v18  ;;  %2579 = vst [vmem:[#allocation31_spill] sm:$0xff] %v1926_v36  ;;  %v444_v18 = vsel %vm437_vm1, %v435_v21, %v1786_v55  ;;  %v1939_v7 = vsel %vm446_vm2, %v445_v23, %v419_v61 }
  0xe1   : > { %v1942_v41 = vsel %vm446_vm2, %v444_v18, %v417_v6  ;;  %754 = vrot.lane.b32.xlu1 %v1797_v58, %s1378_s7  ;;  %752 = vrot.lane.b32.xlu0 %v1800_v59, %s1378_s7  ;;  %v1949_v54 = vmul.f32 %v751_v45, %v1939_v7  ;;  %v1956_v17 = vmul.f32 %v1929_v32, %v1939_v7 }
  0xe2   : > { %2580 = vst [vmem:[#allocation32_spill] sm:$0xff] %v1942_v41  ;;  %v1952_v55 = vmul.f32 %v750_v4, %v1942_v41  ;;  %v1960_v61 = vmul.f32 %v1936_v40, %v1942_v41 }
  0xe3   : > { %2581 = vst [vmem:[#allocation33_spill] sm:$0xff] %v1949_v54  ;;  %2583 = vst [vmem:[#allocation35_spill] sm:$0xff] %v1956_v17  ;;  %v1962_v23 = vpop.permute.xlu1 %465  ;;  %v1964_v18 = vpop.permute.xlu0 %463 }
  0xe4   : > { %2582 = vst [vmem:[#allocation34_spill] sm:$0xff] %v1952_v55  ;;  %2584 = vst [vmem:[#allocation36_spill] sm:$0xff] %v1960_v61  ;;  %v543_v38 = vsel %vm428_vm0, %v2591_v39, %v1964_v18 }
  0xe5   : > { %758 = vrot.lane.b32.xlu1 %v1837_v56, %s1378_s7  ;;  %756 = vrot.lane.b32.xlu0 %v1840_v57, %s1378_s7 }
  0xe7   : > { %v1970_v21 = vpop.permute.xlu1 %469  ;;  %v1972_v6 = vpop.permute.xlu0 %467 }
  0xe9   : > { %762 = vrot.lane.b32.xlu1 %v749_v63, %s1378_s7  ;;  %760 = vrot.lane.b32.xlu0 %v748_v0, %s1378_s7 }
  0xeb   : > { %v1976_v17 = vpop.permute.xlu1 %473  ;;  %v1978_v61 = vpop.permute.xlu0 %471 }
  0xed   : > { %766 = vrot.lane.b32.xlu1 %v751_v45, %s1378_s7  ;;  %764 = vrot.lane.b32.xlu0 %v750_v4, %s1378_s7 }
  0xef   : > { %v1982_v36 = vpop.permute.xlu1 %477  ;;  %v1984_v44 = vpop.permute.xlu0 %475 }
  0xf1   : > { %770 = vrot.lane.b32.xlu1 %v1797_v58, %s1380_s9  ;;  %768 = vrot.lane.b32.xlu0 %v1800_v59, %s1380_s9 }
  0xf3   : > { %v498_v55 = vpop.permute.xlu1 %497  ;;  %v496_v54 = vpop.permute.xlu0 %495 }
  0xf5   : > { %774 = vrot.lane.b32.xlu1 %v1837_v56, %s1380_s9  ;;  %772 = vrot.lane.b32.xlu0 %v1840_v57, %s1380_s9 }
  0xf7   : > { %v1994_v53 = vpop.permute.xlu1 %501  ;;  %v1996_v52 = vpop.permute.xlu0 %499 }
  0xf9   : > { %778 = vrot.lane.b32.xlu1 %v749_v63, %s1380_s9  ;;  %776 = vrot.lane.b32.xlu0 %v748_v0, %s1380_s9 }
  0xfb   : > { %v2000_v58 = vpop.permute.xlu1 %505  ;;  %v2002_v49 = vpop.permute.xlu0 %503 }
  0xfd   : > { %782 = vrot.lane.b32.xlu1 %v751_v45, %s1380_s9  ;;  %780 = vrot.lane.b32.xlu0 %v750_v4, %s1380_s9 }
  0xff   : > { %v2006_v59 = vpop.permute.xlu1 %509  ;;  %v2008_v56 = vpop.permute.xlu0 %507 }
 0x101   : > { %834 = vrot.lane.b32.xlu1 %v1803_v60, %s1378_s7  ;;  %832 = vrot.lane.b32.xlu0 %v1808_v22, %s1378_s7 }
 0x103   : > { %v522_v57 = vpop.permute.xlu1 %521  ;;  %v520_v63 = vpop.permute.xlu0 %519 }
 0x105   : > { %838 = vrot.lane.b32.xlu1 %v1847_v62, %s1378_s7  ;;  %836 = vrot.lane.b32.xlu0 %v1852_v2, %s1378_s7 }
 0x107   : > { %v2018_v0 = vpop.permute.xlu1 %525  ;;  %v2020_v45 = vpop.permute.xlu0 %523 }
 0x109   : > { %842 = vrot.lane.b32.xlu1 %v1889_v19, %s1378_s7  ;;  %840 = vrot.lane.b32.xlu0 %v1894_v16, %s1378_s7 }
 0x10b   : > { %v2026_v4 = vpop.permute.xlu1 %529  ;;  %v2028_v48 = vpop.permute.xlu0 %527 }
 0x10d   : > { %846 = vrot.lane.b32.xlu1 %v1929_v32, %s1378_s7  ;;  %844 = vrot.lane.b32.xlu0 %v1936_v40, %s1378_s7 }
 0x10f   : > { %v2034_v35 = vpop.permute.xlu1 %533  ;;  %v2036_v33 = vpop.permute.xlu0 %531 }
 0x111   : > { %850 = vrot.lane.b32.xlu1 %v1803_v60, %s1380_s9  ;;  %848 = vrot.lane.b32.xlu0 %v1808_v22, %s1380_s9  ;;  %v568_v60 = vand.u32 127, %v567_v47 }
 0x113   : > { %v593_v51 = vpop.permute.xlu1 %592  ;;  %v591_v50 = vpop.permute.xlu0 %590 }
 0x115   : > { %854 = vrot.lane.b32.xlu1 %v1847_v62, %s1380_s9  ;;  %852 = vrot.lane.b32.xlu0 %v1852_v2, %s1380_s9  ;;  %v2069_v62 = vld [vmem:[%s2062_s28 + $0x8] sm:$0xff]  ;;  %v2072_v2 = vld [vmem:[%s2062_s28] sm:$0xff] }
 0x116   : > { %2586 = vst [vmem:[#allocation38_spill] sm:$0xff] %v2069_v62  ;;  %2587 = vst [vmem:[#allocation39_spill] sm:$0xff] %v2072_v2 }
 0x117   : > { %v597_v46 = vpop.permute.xlu1 %596  ;;  %v595_v43 = vpop.permute.xlu0 %594 }
 0x119   : > { %858 = vrot.lane.b32.xlu1 %v1889_v19, %s1380_s9  ;;  %856 = vrot.lane.b32.xlu0 %v1894_v16, %s1380_s9  ;;  %v573_v19 = vand.u32 63, %v568_v60 }
 0x11b   : > { %v2050_v42 = vpop.permute.xlu1 %600  ;;  %v2052_v22 = vpop.permute.xlu0 %598  ;;  %vm2078_vm3 = vcmp.ge.s32.totalorder %v573_v19, 32  ;;  %v633_v19 = vmul.f32 %v1681_v24, %v1811_v1  ;;  %v632_v24 = vmul.f32 %v1684_v25, %v1814_v3 }
 0x11d   : > { %862 = vrot.lane.b32.xlu1 %v1929_v32, %s1380_s9  ;;  %860 = vrot.lane.b32.xlu0 %v1936_v40, %s1380_s9  ;;  %v2590_v40 = vsub.f32 0.0, %v1600_v8 }
 0x11f   : > { %v2064_v16 = vpop.permute.xlu1 %604  ;;  %v2066_v47 = vpop.permute.xlu0 %602  ;;  %v544_v60 = vsel %vm428_vm0, %v2590_v40, %v1962_v23  ;;  %v635_v23 = vmul.f32 %v1691_v26, %v1855_v34 }
 0x120   : > { %2585 = vst [vmem:[#allocation37_spill] sm:$0xff] %v2066_v47  ;;  %v552_v31 = vsel %vm437_vm1, %v544_v60, %v498_v55  ;;  %v2105_v55 = vld [vmem:[%s2062_s28 + $0x18] sm:$0xff]  ;;  %v2595_v60 = vsub.f32 0.0, %v1618_v13 }
 0x121   : > { %914 = vrot.lane.b32.xlu1 %v2069_v62, %s1378_s7  ;;  %912 = vrot.lane.b32.xlu0 %v2072_v2, %s1378_s7  ;;  %v551_v62 = vsel %vm437_vm1, %v543_v38, %v496_v54  ;;  %v2095_v47 = vsel %vm446_vm2, %v552_v31, %v522_v57  ;;  %v2108_v38 = vld [vmem:[%s2062_s28 + $0x10] sm:$0xff] }
 0x122   : > { %v2098_v8 = vsel %vm446_vm2, %v551_v62, %v520_v63 }
 0x123   : > { %v609_v41 = vpop.permute.xlu1 %608  ;;  %v607_v2 = vpop.permute.xlu0 %606 }
 0x124   : > { %v625_v9 = vsel %vm2078_vm3, %v593_v51, %v609_v41  ;;  %v624_v39 = vsel %vm2078_vm3, %v591_v50, %v607_v2  ;;  %v2592_v50 = vsub.f32 0.0, %v1608_v10  ;;  %v2593_v41 = vsub.f32 0.0, %v1610_v11 }
 0x125   : > { %v641_v54 = vmul.f32 %v625_v9, %v2095_v47  ;;  %v640_v31 = vmul.f32 %v624_v39, %v2098_v8  ;;  %918 = vrot.lane.b32.xlu1 %v2105_v55, %s1378_s7  ;;  %916 = vrot.lane.b32.xlu0 %v2108_v38, %s1378_s7 }
 0x126   : > { %v546_v51 = vsel %vm428_vm0, %v2592_v50, %v1970_v21  ;;  %v545_v25 = vsel %vm428_vm0, %v2593_v41, %v1972_v6  ;;  %v2145_v6 = vld [vmem:[%s2062_s28 + $0x28] sm:$0xff]  ;;  %v639_v41 = vmul.f32 %v1711_v30, %v1939_v7 }
 0x127   : > { %v554_v18 = vsel %vm437_vm1, %v546_v51, %v1994_v53  ;;  %v553_v57 = vsel %vm437_vm1, %v545_v25, %v1996_v52  ;;  %v649_v63 = vadd.f32 %v641_v54, %v633_v19  ;;  %v648_v62 = vadd.f32 %v640_v31, %v632_v24  ;;  %v613_v10 = vpop.permute.xlu1 %612  ;;  %v611_v2 = vpop.permute.xlu0 %610  ;;  %v2148_v52 = vld [vmem:[%s2062_s28 + $0x20] sm:$0xff] }
 0x128   : > { %v2134_v21 = vsel %vm446_vm2, %v554_v18, %v2018_v0  ;;  %v2138_v11 = vsel %vm446_vm2, %v553_v57, %v2020_v45  ;;  %v627_v26 = vsel %vm2078_vm3, %v597_v46, %v613_v10  ;;  %v626_v53 = vsel %vm2078_vm3, %v595_v43, %v611_v2 }
 0x129   : > { %657 = vst [vmem:[%s2152_s12 + $0x20] sm:$0xff] %v649_v63  ;;  %656 = vst [vmem:[%s2152_s12] sm:$0xff] %v648_v62  ;;  %v643_v0 = vmul.f32 %v627_v26, %v2134_v21  ;;  %v634_v45 = vmul.f32 %v1694_v27, %v1858_v20  ;;  %v642_v46 = vmul.f32 %v626_v53, %v2138_v11  ;;  %922 = vrot.lane.b32.xlu1 %v2145_v6, %s1378_s7  ;;  %v2599_v62 = vld [vmem:[#allocation32_spill] sm:$0xff]  ;;  %v2602_v26 = vld [vmem:[#allocation39_spill] sm:$0xff] }
 0x12a   : > { %920 = vrot.lane.b32.xlu0 %v2148_v52, %s1378_s7  ;;  %v2594_v43 = vsub.f32 0.0, %v1616_v12  ;;  %v547_v27 = vsel %vm428_vm0, %v2595_v60, %v1978_v61  ;;  %v637_v19 = vmul.f32 %v1701_v28, %v1897_v5  ;;  %v2193_v61 = vld [vmem:[%s2062_s28 + $0x38] sm:$0xff]  ;;  %v2597_v51 = vsub.f32 0.0, %v1626_v15 }
 0x12b   : > { %v555_v39 = vsel %vm437_vm1, %v547_v27, %v2002_v49  ;;  %v651_v54 = vadd.f32 %v643_v0, %v635_v23  ;;  %v650_v12 = vadd.f32 %v642_v46, %v634_v45  ;;  %v617_v24 = vpop.permute.xlu1 %616  ;;  %v615_v31 = vpop.permute.xlu0 %614 }
 0x12c   : > { %v548_v40 = vsel %vm428_vm0, %v2594_v43, %v1976_v17  ;;  %v2184_v13 = vsel %vm446_vm2, %v555_v39, %v2028_v48  ;;  %v629_v28 = vsel %vm2078_vm3, %v2050_v42, %v617_v24  ;;  %v628_v49 = vsel %vm2078_vm3, %v2052_v22, %v615_v31  ;;  %v2603_v24 = vld [vmem:[#allocation12_spill] sm:$0xff] }
 0x12d   : > { %v556_v9 = vsel %vm437_vm1, %v548_v40, %v2000_v58  ;;  %v2196_v58 = vld [vmem:[%s2062_s28 + $0x30] sm:$0xff]  ;;  %659 = vst [vmem:[%s2152_s12 + $0x60] sm:$0xff] %v651_v54  ;;  %658 = vst [vmem:[%s2152_s12 + $0x40] sm:$0xff] %v650_v12  ;;  %v636_v48 = vmul.f32 %v1704_v29, %v1900_v37  ;;  %v644_v50 = vmul.f32 %v628_v49, %v2184_v13  ;;  %926 = vrot.lane.b32.xlu1 %v2193_v61, %s1378_s7 }
 0x12e   : > { %v2180_v17 = vsel %vm446_vm2, %v556_v9, %v2026_v4  ;;  %924 = vrot.lane.b32.xlu0 %v2196_v58, %s1378_s7  ;;  %v2596_v42 = vsub.f32 0.0, %v1624_v14  ;;  %v549_v29 = vsel %vm428_vm0, %v2597_v51, %v1984_v44  ;;  %v2598_v44 = vld [vmem:[#allocation37_spill] sm:$0xff]  ;;  %v713_v31 = vmul.f32 %v2603_v24, %v1811_v1 }
 0x12f   : > { %v645_v4 = vmul.f32 %v629_v28, %v2180_v17  ;;  %v557_v23 = vsel %vm437_vm1, %v549_v29, %v2008_v56  ;;  %v652_v57 = vadd.f32 %v644_v50, %v636_v48  ;;  %v621_v63 = vpop.permute.xlu1 %620  ;;  %v619_v14 = vpop.permute.xlu0 %618  ;;  %v2604_v49 = vld [vmem:[#allocation13_spill] sm:$0xff] }
 0x130   : > { %v550_v22 = vsel %vm428_vm0, %v2596_v42, %v1982_v36  ;;  %v2228_v15 = vsel %vm446_vm2, %v557_v23, %v2036_v33  ;;  %v631_v30 = vsel %vm2078_vm3, %v2064_v16, %v621_v63  ;;  %v2601_v33 = vld [vmem:[#allocation38_spill] sm:$0xff] }
 0x131   : > { %v558_v25 = vsel %vm437_vm1, %v550_v22, %v2006_v59  ;;  %v653_v18 = vadd.f32 %v645_v4, %v637_v19  ;;  %v630_v59 = vsel %vm2078_vm3, %v2598_v44, %v619_v14  ;;  %660 = vst [vmem:[%s2152_s12 + $0x80] sm:$0xff] %v652_v57  ;;  %930 = vrot.lane.b32.xlu1 %v2601_v33, %s1380_s9  ;;  %v2606_v57 = vld [vmem:[#allocation15_spill] sm:$0xff] }
 0x132   : > { %v2224_v36 = vsel %vm446_vm2, %v558_v25, %v2034_v35  ;;  %v2600_v35 = vld [vmem:[#allocation11_spill] sm:$0xff]  ;;  %v646_v2 = vmul.f32 %v630_v59, %v2228_v15  ;;  %928 = vrot.lane.b32.xlu0 %v2602_v26, %s1380_s9  ;;  %v712_v4 = vmul.f32 %v2604_v49, %v1814_v3  ;;  %v2605_v25 = vld [vmem:[#allocation14_spill] sm:$0xff]  ;;  %v714_v63 = vmul.f32 %v2606_v57, %v1858_v20 }
 0x133   : > { %661 = vst [vmem:[%s2152_s12 + $0xa0] sm:$0xff] %v653_v18  ;;  %v647_v56 = vmul.f32 %v631_v30, %v2224_v36  ;;  %v638_v10 = vmul.f32 %v2600_v35, %v2599_v62  ;;  %v675_v0 = vpop.permute.xlu1 %674  ;;  %v673_v45 = vpop.permute.xlu0 %672  ;;  %v715_v23 = vmul.f32 %v2605_v25, %v1855_v34 }
 0x135   : > { %v655_v16 = vadd.f32 %v647_v56, %v639_v41  ;;  %v654_v53 = vadd.f32 %v646_v2, %v638_v10  ;;  %934 = vrot.lane.b32.xlu1 %v2105_v55, %s1380_s9  ;;  %v2607_v2 = vld [vmem:[#allocation16_spill] sm:$0xff] }
 0x136   : > { %932 = vrot.lane.b32.xlu0 %v2108_v38, %s1380_s9 }
 0x137   : > { %663 = vst [vmem:[%s2152_s12 + $0xe0] sm:$0xff] %v655_v16  ;;  %662 = vst [vmem:[%s2152_s12 + $0xc0] sm:$0xff] %v654_v53  ;;  %v679_v46 = vpop.permute.xlu1 %678  ;;  %v677_v43 = vpop.permute.xlu0 %676  ;;  %v717_v16 = vmul.f32 %v2607_v2, %v1897_v5 }
 0x139   : > { %938 = vrot.lane.b32.xlu1 %v2145_v6, %s1380_s9 }
 0x13a   : > { %936 = vrot.lane.b32.xlu0 %v2148_v52, %s1380_s9 }
 0x13b   : > { %v683_v40 = vpop.permute.xlu1 %682  ;;  %v681_v60 = vpop.permute.xlu0 %680 }
 0x13d   : > { %942 = vrot.lane.b32.xlu1 %v2193_v61, %s1380_s9 }
 0x13e   : > { %940 = vrot.lane.b32.xlu0 %v2196_v58, %s1380_s9  ;;  %s1279_s9 = scalar_lea.vmem %s2393_s14, 4096 }
 0x13f   : > { %v687_v27 = vpop.permute.xlu1 %686  ;;  %v685_v19 = vpop.permute.xlu0 %684  ;;  %p1280_p12 = scmp.ne.s32.totalorder %s2393_s14, %s1279_s9  ;;  %p1287_p8 = scmp.lt.s32.totalorder %s1285_s13, %s1279_s9 }
 0x141   : > { %p1281_p4 = pnand %p1280_p12, %p2627_p13  ;;  %p1288_p10 = por %p1287_p8, %p1286_p7 }
 0x143   : > { %v691_v9 = vpop.permute.xlu1 %690  ;;  %v689_v39 = vpop.permute.xlu0 %688  ;;  %p1282_p5 = pneg %p1281_p4 }
 0x144   : > { %v705_v54 = vsel %vm2078_vm3, %v675_v0, %v691_v9  ;;  %v704_v12 = vsel %vm2078_vm3, %v673_v45, %v689_v39  ;;  %v2608_v0 = vld [vmem:[#allocation17_spill] sm:$0xff] }
 0x145   : > { %v721_v28 = vmul.f32 %v705_v54, %v2095_v47  ;;  %v720_v48 = vmul.f32 %v704_v12, %v2098_v8  ;;  %v716_v45 = vmul.f32 %v2608_v0, %v1900_v37  ;;  %v2609_v12 = vld [vmem:[#allocation18_spill] sm:$0xff]  ;;  %p1289_p0 = pnand %p1288_p10, %p1282_p5 }
 0x146   : > { %v719_v24 = vmul.f32 %v2609_v12, %v1939_v7 }
 0x147   : > { %v729_v50 = vadd.f32 %v721_v28, %v713_v31  ;;  %v728_v42 = vadd.f32 %v720_v48, %v712_v4  ;;  %v695_v22 = vpop.permute.xlu1 %694  ;;  %v693_v51 = vpop.permute.xlu0 %692  ;;  %v2610_v28 = vld [vmem:[#allocation19_spill] sm:$0xff] }
 0x148   : > { %v707_v29 = vsel %vm2078_vm3, %v679_v46, %v695_v22  ;;  %v706_v41 = vsel %vm2078_vm3, %v677_v43, %v693_v51  ;;  %v718_v49 = vmul.f32 %v2610_v28, %v2599_v62  ;;  %v2615_v28 = vld [vmem:[#allocation28_spill] sm:$0xff] }
 0x149   : > { %737 = vst [vmem:[%s2152_s12 + $0x28] sm:$0xff] %v729_v50  ;;  %736 = vst [vmem:[%s2152_s12 + $0x8] sm:$0xff] %v728_v42  ;;  %v723_v18 = vmul.f32 %v707_v29, %v2134_v21  ;;  %v722_v14 = vmul.f32 %v706_v41, %v2138_v11 }
 0x14b   : > { %v731_v30 = vadd.f32 %v723_v18, %v715_v23  ;;  %v730_v44 = vadd.f32 %v722_v14, %v714_v63  ;;  %v699_v59 = vpop.permute.xlu1 %698  ;;  %v697_v56 = vpop.permute.xlu0 %696 }
 0x14c   : > { %v709_v35 = vsel %vm2078_vm3, %v683_v40, %v699_v59  ;;  %v708_v10 = vsel %vm2078_vm3, %v681_v60, %v697_v56  ;;  %v2612_v56 = vld [vmem:[#allocation21_spill] sm:$0xff] }
 0x14d   : > { %739 = vst [vmem:[%s2152_s12 + $0x68] sm:$0xff] %v731_v30  ;;  %738 = vst [vmem:[%s2152_s12 + $0x48] sm:$0xff] %v730_v44  ;;  %v725_v53 = vmul.f32 %v709_v35, %v2180_v17  ;;  %v724_v46 = vmul.f32 %v708_v10, %v2184_v13  ;;  %v2611_v44 = vld [vmem:[#allocation20_spill] sm:$0xff] }
 0x14f   : > { %v733_v43 = vadd.f32 %v725_v53, %v717_v16  ;;  %v732_v9 = vadd.f32 %v724_v46, %v716_v45  ;;  %v703_v40 = vpop.permute.xlu1 %702  ;;  %v701_v39 = vpop.permute.xlu0 %700  ;;  %v2613_v46 = vld [vmem:[#allocation24_spill] sm:$0xff] }
 0x150   : > { %v711_v60 = vsel %vm2078_vm3, %v687_v27, %v703_v40  ;;  %v710_v54 = vsel %vm2078_vm3, %v685_v19, %v701_v39 }
 0x151   : > { %741 = vst [vmem:[%s2152_s12 + $0xa8] sm:$0xff] %v733_v43  ;;  %740 = vst [vmem:[%s2152_s12 + $0x88] sm:$0xff] %v732_v9  ;;  %v727_v31 = vmul.f32 %v711_v60, %v2224_v36  ;;  %v726_v4 = vmul.f32 %v710_v54, %v2228_v15  ;;  %v2614_v9 = vld [vmem:[#allocation25_spill] sm:$0xff] }
 0x153   : > { %v735_v48 = vadd.f32 %v727_v31, %v719_v24  ;;  %v734_v50 = vadd.f32 %v726_v4, %v718_v49  ;;  %v755_v42 = vpop.permute.xlu1 %754  ;;  %v753_v22 = vpop.permute.xlu0 %752  ;;  %v2616_v4 = vld [vmem:[#allocation29_spill] sm:$0xff] }
 0x155   : > { %743 = vst [vmem:[%s2152_s12 + $0xe8] sm:$0xff] %v735_v48  ;;  %742 = vst [vmem:[%s2152_s12 + $0xc8] sm:$0xff] %v734_v50 }
 0x157   : > { %v759_v27 = vpop.permute.xlu1 %758  ;;  %v757_v19 = vpop.permute.xlu0 %756 }
 0x15b   : > { %v763_v51 = vpop.permute.xlu1 %762  ;;  %v761_v29 = vpop.permute.xlu0 %760 }
 0x15f   : > { %v767_v41 = vpop.permute.xlu1 %766  ;;  %v765_v25 = vpop.permute.xlu0 %764 }
 0x163   : > { %v771_v23 = vpop.permute.xlu1 %770  ;;  %v769_v18 = vpop.permute.xlu0 %768 }
 0x164   : > { %v785_v57 = vsel %vm2078_vm3, %v755_v42, %v771_v23  ;;  %v784_v63 = vsel %vm2078_vm3, %v753_v22, %v769_v18  ;;  %v2618_v18 = vld [vmem:[#allocation34_spill] sm:$0xff] }
 0x165   : > { %v801_v14 = vmul.f32 %v785_v57, %v2095_v47  ;;  %v800_v30 = vmul.f32 %v784_v63, %v2098_v8 }
 0x167   : > { %v809_v59 = vadd.f32 %v801_v14, %v2611_v44  ;;  %v808_v35 = vadd.f32 %v800_v30, %v2612_v56  ;;  %v775_v10 = vpop.permute.xlu1 %774  ;;  %v773_v2 = vpop.permute.xlu0 %772 }
 0x168   : > { %v787_v16 = vsel %vm2078_vm3, %v759_v27, %v775_v10  ;;  %v786_v53 = vsel %vm2078_vm3, %v757_v19, %v773_v2 }
 0x169   : > { %817 = vst [vmem:[%s2152_s12 + $0x30] sm:$0xff] %v809_v59  ;;  %816 = vst [vmem:[%s2152_s12 + $0x10] sm:$0xff] %v808_v35  ;;  %v803_v0 = vmul.f32 %v787_v16, %v2134_v21  ;;  %v802_v45 = vmul.f32 %v786_v53, %v2138_v11 }
 0x16b   : > { %v811_v43 = vadd.f32 %v803_v0, %v2613_v46  ;;  %v810_v40 = vadd.f32 %v802_v45, %v2614_v9  ;;  %v779_v39 = vpop.permute.xlu1 %778  ;;  %v777_v60 = vpop.permute.xlu0 %776  ;;  %v2619_v45 = vld [vmem:[#allocation22_spill] sm:$0xff] }
 0x16c   : > { %v789_v54 = vsel %vm2078_vm3, %v763_v51, %v779_v39  ;;  %v788_v12 = vsel %vm2078_vm3, %v761_v29, %v777_v60  ;;  %v2617_v29 = vld [vmem:[#allocation33_spill] sm:$0xff] }
 0x16d   : > { %819 = vst [vmem:[%s2152_s12 + $0x70] sm:$0xff] %v811_v43  ;;  %818 = vst [vmem:[%s2152_s12 + $0x50] sm:$0xff] %v810_v40  ;;  %v805_v24 = vmul.f32 %v789_v54, %v2180_v17  ;;  %v804_v31 = vmul.f32 %v788_v12, %v2184_v13  ;;  %v2620_v43 = vld [vmem:[#allocation23_spill] sm:$0xff] }
 0x16f   : > { %v813_v49 = vadd.f32 %v805_v24, %v2615_v28  ;;  %v812_v48 = vadd.f32 %v804_v31, %v2616_v4  ;;  %v783_v50 = vpop.permute.xlu1 %782  ;;  %v781_v42 = vpop.permute.xlu0 %780  ;;  %v2621_v31 = vld [vmem:[#allocation26_spill] sm:$0xff] }
 0x170   : > { %v791_v22 = vsel %vm2078_vm3, %v767_v41, %v783_v50  ;;  %v790_v27 = vsel %vm2078_vm3, %v765_v25, %v781_v42 }
 0x171   : > { %821 = vst [vmem:[%s2152_s12 + $0xb0] sm:$0xff] %v813_v49  ;;  %820 = vst [vmem:[%s2152_s12 + $0x90] sm:$0xff] %v812_v48  ;;  %v807_v19 = vmul.f32 %v791_v22, %v2224_v36  ;;  %v806_v51 = vmul.f32 %v790_v27, %v2228_v15  ;;  %v2622_v49 = vld [vmem:[#allocation27_spill] sm:$0xff] }
 0x173   : > { %v815_v23 = vadd.f32 %v807_v19, %v2617_v29  ;;  %v814_v57 = vadd.f32 %v806_v51, %v2618_v18  ;;  %v835_v63 = vpop.permute.xlu1 %834  ;;  %v833_v14 = vpop.permute.xlu0 %832  ;;  %v2623_v51 = vld [vmem:[#allocation30_spill] sm:$0xff] }
 0x175   : > { %823 = vst [vmem:[%s2152_s12 + $0xf0] sm:$0xff] %v815_v23  ;;  %822 = vst [vmem:[%s2152_s12 + $0xd0] sm:$0xff] %v814_v57  ;;  %v2624_v23 = vld [vmem:[#allocation31_spill] sm:$0xff] }
 0x177   : > { %v839_v30 = vpop.permute.xlu1 %838  ;;  %v837_v44 = vpop.permute.xlu0 %836 }
 0x17b   : > { %v843_v41 = vpop.permute.xlu1 %842  ;;  %v841_v59 = vpop.permute.xlu0 %840 }
 0x17f   : > { %v847_v25 = vpop.permute.xlu1 %846  ;;  %v845_v56 = vpop.permute.xlu0 %844 }
 0x183   : > { %v851_v35 = vpop.permute.xlu1 %850  ;;  %v849_v10 = vpop.permute.xlu0 %848 }
 0x184   : > { %v865_v2 = vsel %vm2078_vm3, %v835_v63, %v851_v35  ;;  %v864_v16 = vsel %vm2078_vm3, %v833_v14, %v849_v10  ;;  %v2626_v10 = vld [vmem:[#allocation36_spill] sm:$0xff] }
 0x185   : > { %v881_v53 = vmul.f32 %v865_v2, %v2095_v47  ;;  %v880_v0 = vmul.f32 %v864_v16, %v2098_v8 }
 0x187   : > { %v889_v46 = vadd.f32 %v881_v53, %v2619_v45  ;;  %v888_v9 = vadd.f32 %v880_v0, %v2620_v43  ;;  %v855_v40 = vpop.permute.xlu1 %854  ;;  %v853_v39 = vpop.permute.xlu0 %852 }
 0x188   : > { %v867_v60 = vsel %vm2078_vm3, %v839_v30, %v855_v40  ;;  %v866_v54 = vsel %vm2078_vm3, %v837_v44, %v853_v39 }
 0x189   : > { %897 = vst [vmem:[%s2152_s12 + $0x38] sm:$0xff] %v889_v46  ;;  %896 = vst [vmem:[%s2152_s12 + $0x18] sm:$0xff] %v888_v9  ;;  %v883_v12 = vmul.f32 %v867_v60, %v2134_v21  ;;  %v882_v24 = vmul.f32 %v866_v54, %v2138_v11 }
 0x18b   : > { %v891_v28 = vadd.f32 %v883_v12, %v2621_v31  ;;  %v890_v4 = vadd.f32 %v882_v24, %v2622_v49  ;;  %v859_v48 = vpop.permute.xlu1 %858  ;;  %v857_v50 = vpop.permute.xlu0 %856 }
 0x18c   : > { %v869_v42 = vsel %vm2078_vm3, %v843_v41, %v859_v48  ;;  %v868_v22 = vsel %vm2078_vm3, %v841_v59, %v857_v50  ;;  %v2625_v59 = vld [vmem:[#allocation35_spill] sm:$0xff] }
 0x18d   : > { %899 = vst [vmem:[%s2152_s12 + $0x78] sm:$0xff] %v891_v28  ;;  %898 = vst [vmem:[%s2152_s12 + $0x58] sm:$0xff] %v890_v4  ;;  %v885_v27 = vmul.f32 %v869_v42, %v2180_v17  ;;  %v884_v19 = vmul.f32 %v868_v22, %v2184_v13 }
 0x18f   : > { %v893_v29 = vadd.f32 %v885_v27, %v2623_v51  ;;  %v892_v18 = vadd.f32 %v884_v19, %v2624_v23  ;;  %v863_v57 = vpop.permute.xlu1 %862  ;;  %v861_v63 = vpop.permute.xlu0 %860 }
 0x190   : > { %v871_v14 = vsel %vm2078_vm3, %v847_v25, %v863_v57  ;;  %v870_v30 = vsel %vm2078_vm3, %v845_v56, %v861_v63 }
 0x191   : > { %901 = vst [vmem:[%s2152_s12 + $0xb8] sm:$0xff] %v893_v29  ;;  %900 = vst [vmem:[%s2152_s12 + $0x98] sm:$0xff] %v892_v18  ;;  %v887_v44 = vmul.f32 %v871_v14, %v2224_v36  ;;  %v886_v41 = vmul.f32 %v870_v30, %v2228_v15 }
 0x193   : > { %v895_v35 = vadd.f32 %v887_v44, %v2625_v59  ;;  %v894_v25 = vadd.f32 %v886_v41, %v2626_v10  ;;  %v915_v2 = vpop.permute.xlu1 %914  ;;  %v913_v16 = vpop.permute.xlu0 %912 }
 0x195   : > { %903 = vst [vmem:[%s2152_s12 + $0xf8] sm:$0xff] %v895_v35  ;;  %902 = vst [vmem:[%s2152_s12 + $0xd8] sm:$0xff] %v894_v25 }
 0x196   : > { %1292 = shalt.err (!%p1289_p0)
}
 0x197   : > { %s1293_s17 = scalar_lea.hbm %s2389_s8, 4096  ;;  %s1297_s12 = scalar_lea.hbm %s2526_s4, 8192 }
 0x198   : > { %p1294_p2 = scmp.ne.s32.totalorder %s2389_s8, %s1293_s17  ;;  %p1298_p3 = scmp.lt.s32.totalorder %s2389_s8, %s2526_s4 }
 0x199   : > { %p1299_p6 = scmp.lt.s32.totalorder %s1297_s12, %s1293_s17 }
 0x19a   : > { %p1295_p9 = pnand %p1294_p2, %p2627_p13 }
 0x19b   : > { %p1300_p11 = por %p1299_p6, %p1298_p3 }
 0x19c   : > { %p1296_p1 = pneg %p1295_p9 }
 0x19e   : > { %p1301_p12 = pnand %p1300_p11, %p1296_p1 }
 0x1a0   : > { %1304 = shalt.err (!%p1301_p12)
}
 0x1a1   : > { %s1382_s16 = smov 512   ;;  %v919_v56 = vpop.permute.xlu1 %918  ;;  %v917_v53 = vpop.permute.xlu0 %916  ;;  %s1171_s9 = sshll.u32 %s1513_s23, 6  ;;  %v953_v54 = vmul.f32 %v2601_v33, %v1811_v1  ;;  %v952_v12 = vmul.f32 %v2602_v26, %v1814_v3  ;;  %v955_v1 = vmul.f32 %v2105_v55, %v1855_v34  ;;  %v954_v3 = vmul.f32 %v2108_v38, %v1858_v20 }
 0x1a2   : > { %1194 = dma.vmem_to_hbm [thread:$0]  (%p2627_p13), %s2393_s14, 4096, %s2389_s8, %s985_s29, %s1382_s16, %s1382_s16, %s1378_s7   ;;  %v957_v22 = vmul.f32 %v2145_v6, %v1897_v5  ;;  %v959_v6 = vmul.f32 %v2193_v61, %v1939_v7 }
 0x1a3   : > { %s2440_s7 = scalar_lea.vmem [#allocation6], %s1171_s9  ;;  %s1191_s14 = sshll.u32 %s1437_s22, 10 }
 0x1a4   : > { %s1020_s8 = sshll.u32 %s2440_s7, 4  ;;  %s2475_s10 = scalar_lea.hbm %s2527_s5, %s1191_s14  ;;  %s2477_s8 = int_to_ptr.vmem [resolvable:$true] %s1020_s8 }
 0x1a5   : > { %v923_v0 = vpop.permute.xlu1 %922  ;;  %v921_v45 = vpop.permute.xlu0 %920  ;;  %s990_s11 = scalar_lea.sflag [#allocation7], %s1513_s23  ;;  %s1305_s13 = scalar_lea.vmem %s2477_s8, 1024 }
 0x1a6   : > { %p1306_p4 = scmp.ne.s32.totalorder %s2477_s8, %s1305_s13  ;;  %s1383_s17 = smov [#allocation6]  }
 0x1a7   : > { %s1309_s26 = sshll.u32 %s1383_s17, 4  ;;  %s1310_s26 = int_to_ptr.vmem [resolvable:$false] %s1309_s26 }
 0x1a8   : > { %p1307_p5 = pnand %p1306_p4, %p2627_p13  ;;  %s1311_s28 = scalar_lea.vmem %s1310_s26, 2048 }
 0x1a9   : > { %v927_v46 = vpop.permute.xlu1 %926  ;;  %v925_v43 = vpop.permute.xlu0 %924  ;;  %p1312_p8 = scmp.lt.s32.totalorder %s2477_s8, %s1310_s26  ;;  %p1313_p10 = scmp.lt.s32.totalorder %s1311_s28, %s1305_s13 }
 0x1aa   : > { %p1308_p7 = pneg %p1307_p5 }
 0x1ab   : > { %p1314_p0 = por %p1313_p10, %p1312_p8 }
 0x1ad   : > { %v931_v9 = vpop.permute.xlu1 %930  ;;  %v929_v40 = vpop.permute.xlu0 %928  ;;  %p1315_p2 = pnand %p1314_p0, %p1308_p7 }
 0x1ae   : > { %v945_v39 = vsel %vm2078_vm3, %v915_v2, %v931_v9  ;;  %v944_v60 = vsel %vm2078_vm3, %v913_v16, %v929_v40 }
 0x1af   : > { %v961_v24 = vmul.f32 %v945_v39, %v2095_v47  ;;  %v960_v31 = vmul.f32 %v944_v60, %v2098_v8 }
 0x1b1   : > { %v969_v28 = vadd.f32 %v961_v24, %v953_v54  ;;  %v968_v49 = vadd.f32 %v960_v31, %v952_v12  ;;  %v935_v4 = vpop.permute.xlu1 %934  ;;  %v933_v48 = vpop.permute.xlu0 %932 }
 0x1b2   : > { %v947_v50 = vsel %vm2078_vm3, %v919_v56, %v935_v4  ;;  %v946_v42 = vsel %vm2078_vm3, %v917_v53, %v933_v48 }
 0x1b3   : > { %977 = vst [vmem:[%s2440_s7 + $0x8] sm:$0xff] %v969_v28  ;;  %976 = vst [vmem:[%s2440_s7] sm:$0xff] %v968_v49  ;;  %v963_v47 = vmul.f32 %v947_v50, %v2134_v21  ;;  %v962_v8 = vmul.f32 %v946_v42, %v2138_v11  ;;  %v956_v21 = vmul.f32 %v2148_v52, %v1900_v37 }
 0x1b4   : > { %v958_v52 = vmul.f32 %v2196_v58, %v2599_v62 }
 0x1b5   : > { %v971_v33 = vadd.f32 %v963_v47, %v955_v1  ;;  %v970_v26 = vadd.f32 %v962_v8, %v954_v3  ;;  %v939_v34 = vpop.permute.xlu1 %938  ;;  %v937_v55 = vpop.permute.xlu0 %936 }
 0x1b6   : > { %v949_v20 = vsel %vm2078_vm3, %v923_v0, %v939_v34  ;;  %v948_v38 = vsel %vm2078_vm3, %v921_v45, %v937_v55 }
 0x1b7   : > { %979 = vst [vmem:[%s2440_s7 + $0x18] sm:$0xff] %v971_v33  ;;  %978 = vst [vmem:[%s2440_s7 + $0x10] sm:$0xff] %v970_v26  ;;  %v965_v11 = vmul.f32 %v949_v20, %v2180_v17  ;;  %v964_v27 = vmul.f32 %v948_v38, %v2184_v13 }
 0x1b9   : > { %v973_v19 = vadd.f32 %v965_v11, %v957_v22  ;;  %v972_v51 = vadd.f32 %v964_v27, %v956_v21  ;;  %v943_v29 = vpop.permute.xlu1 %942  ;;  %v941_v23 = vpop.permute.xlu0 %940 }
 0x1ba   : > { %v951_v5 = vsel %vm2078_vm3, %v927_v46, %v943_v29  ;;  %v950_v37 = vsel %vm2078_vm3, %v925_v43, %v941_v23 }
 0x1bb   : > { %981 = vst [vmem:[%s2440_s7 + $0x28] sm:$0xff] %v973_v19  ;;  %980 = vst [vmem:[%s2440_s7 + $0x20] sm:$0xff] %v972_v51  ;;  %v967_v17 = vmul.f32 %v951_v5, %v2224_v36  ;;  %v966_v13 = vmul.f32 %v950_v37, %v2228_v15 }
 0x1bd   : > { %v975_v7 = vadd.f32 %v967_v17, %v959_v6  ;;  %v974_v32 = vadd.f32 %v966_v13, %v958_v52 }
 0x1bf   : > { %983 = vst [vmem:[%s2440_s7 + $0x38] sm:$0xff] %v975_v7  ;;  %982 = vst [vmem:[%s2440_s7 + $0x30] sm:$0xff] %v974_v32 }
 0x1c0   : > { %1318 = shalt.err (!%p1315_p2)
}
 0x1c1   : > { %s1319_s12 = scalar_lea.hbm %s2475_s10, 1024  ;;  %s1323_s16 = scalar_lea.hbm %s2527_s5, 2048 }
 0x1c2   : > { %p1320_p9 = scmp.ne.s32.totalorder %s2475_s10, %s1319_s12  ;;  %p1324_p6 = scmp.lt.s32.totalorder %s2475_s10, %s2527_s5 }
 0x1c3   : > { %p1325_p11 = scmp.lt.s32.totalorder %s1323_s16, %s1319_s12 }
 0x1c4   : > { %p1321_p1 = pnand %p1320_p9, %p2627_p13 }
 0x1c5   : > { %p1326_p12 = por %p1325_p11, %p1324_p6 }
 0x1c6   : > { %p1322_p3 = pneg %p1321_p1 }
 0x1c8   : > { %p1327_p4 = pnand %p1326_p12, %p1322_p3 }
 0x1ca   : > { %1330 = shalt.err (!%p1327_p4)
}
 0x1cb   : > { %s1384_s14 = smov 128   ;;  %s1385_s22 = smov 8  }
 0x1cc   : > { %1195 = dma.vmem_to_hbm [thread:$0]  (%p2627_p13), %s2477_s8, 1024, %s2475_s10, %s990_s11, %s1384_s14, %s1384_s14, %s1385_s22  }
 0x1cd PF: > { %s1035_s29 = sand.u32 1, %s1361_s18   ;;  %p2628_p5 = scmp.ne.s32.totalorder %s2556_s6, 0 }
 0x1ce   : > { %p2629_p7 = scmp.ge.s32.totalorder %s1373_s21, 2  ;;  %s1036_s13 = scalar_lea.sflag [#allocation4], %s1035_s29 }
 0x1d0   : > { %p1203_p8 = pnand %p2629_p7, %p2628_p5 }
 0x1d2   : > { %p1204_p10 = pneg %p1203_p8 }
 0x1d4   : > { %1352 = dma.done.wait (%p1204_p10), %s1036_s13, 4096  }
 0x1d5   : > { %1354 = vsyncadd (%p1204_p10), %s1036_s13, 4294963200  ;;  %s1045_s17 = scalar_lea.sflag [#allocation7], %s1035_s29 }
 0x1d6   : > { %1356 = dma.done.wait (%p1204_p10), %s1045_s17, 1024  }
 0x1d7   : > { %1358 = vsyncadd (%p1204_p10), %s1045_s17, 4294966272  ;;  %p22_p13 = scmp.ge.s32.totalorder %s1441_s24, 4   ;;  %s2630_s18 = smov %s1365_s19 }
 0x1d8   : > { %s2631_s19 = smov %s1369_s20  ;;  %s2632_s20 = smov %s1453_s27 }
 0x1d9   : > { %s2633_s21 = smov %s1441_s24  ;;  %24 = sbr.rel (!%p22_p13) target bundleno = 7 (0x7), region = 107 }
 0x1de   :  { %1050 = vsyncpa [#allocation3], 1 }
 0x1df   :  { %1052 = vsyncpa [#allocation3 + $0x1], 1 }
 0x1e0   :  { %1053 = vsyncpa [#allocation4], 1 }
 0x1e1   :  { %1055 = vsyncpa [#allocation4 + $0x1], 1 }
 0x1e2   :  { %1056 = vsyncpa [#allocation7], 1 }
 0x1e3   :  { %1058 = vsyncpa [#allocation7 + $0x1], 1 }

</bundles_post_ra>
